<compile_context>
chip_gen: v7x
topology: tpu7x:2x2x1
jax: 0.10.0
libtpu: 0.0.40
codegen_flags: <defaults>
</compile_context>

<pallas_src>
import functools

import jax
import jax.numpy as jnp
from jax.experimental import pallas as pl
from jax.experimental.pallas import tpu as pltpu

LN_EPS = 1e-5
BN_EPS = 1e-5


# --------------------------------------------------------------------------- #
# Pass 1: LayerNorm (folded affine) -> fused pointwise conv -> GLU ->
#         depthwise conv over a halo'd VMEM scratch -> per-tile BN partials.
# --------------------------------------------------------------------------- #
def _stage1_kernel(xp_ref, xm_ref, xq_ref, w1_ref, b1_ref, wd_ref,
                   dw_ref, psum_ref, psumsq_ref, gp_ref, *, nT):
    t = pl.program_id(1)
    tT = xm_ref.shape[1]
    D = xm_ref.shape[2]
    H = xp_ref.shape[1]
    K = wd_ref.shape[0]
    C = wd_ref.shape[1]
    pad = (K - 1) // 2

    w1 = w1_ref[...]                       # (D, 2C) bf16, LN gamma folded in
    b1 = b1_ref[...]                       # (1, 2C) f32, LN beta folded in
    wd = wd_ref[...]                       # (K, C) f32, lane = channel

    def ln_pw_glu(x):                      # x: (n, D) f32 -> (n, C) f32
        s1 = jnp.sum(x, axis=-1, keepdims=True)
        s2 = jnp.sum(x * x, axis=-1, keepdims=True)
        mu = s1 / D
        var = jnp.maximum(s2 / D - mu * mu, 0.0)       # clamp (cancellation)
        xh = (x - mu) * jax.lax.rsqrt(var + LN_EPS)
        h = jnp.dot(xh.astype(jnp.bfloat16), w1,
                    preferred_element_type=jnp.float32) + b1
        return h[:, :C] * jax.nn.sigmoid(h[:, C:])     # GLU, lane-aligned split

    # main tile
    gp_ref[pl.ds(pad, tT), :] = ln_pw_glu(xm_ref[0].astype(jnp.float32))

    # halo rows (re-computed from the clamped neighbour x blocks; zero at edges)
    if pad > 0:
        if nT > 1:
            g_prev = ln_pw_glu(xp_ref[0].astype(jnp.float32))   # (H, C)
            g_next = ln_pw_glu(xq_ref[0].astype(jnp.float32))   # (H, C)
            gp_ref[pl.ds(0, pad), :] = jnp.where(t > 0, g_prev[H - pad:, :], 0.0)
            gp_ref[pl.ds(pad + tT, pad), :] = jnp.where(
                t < nT - 1, g_next[:pad, :], 0.0)
        else:
            gp_ref[pl.ds(0, pad), :] = jnp.zeros((pad, C), jnp.float32)
            gp_ref[pl.ds(pad + tT, pad), :] = jnp.zeros((pad, C), jnp.float32)

    # depthwise Conv1d along T (SAME), f32 taps, K is a small static constant.
    # TODO(synk): switch to pltpu.roll / packed-bf16 taps if the VALU binds.
    dw = gp_ref[pl.ds(0, tT), :] * wd[0][None, :]
    for k in range(1, K):
        dw = dw + gp_ref[pl.ds(k, tT), :] * wd[k][None, :]

    # exact (f32) per-tile BatchNorm partial statistics
    psum_ref[...] = jnp.sum(dw, axis=0).reshape(1, 1, C)
    psumsq_ref[...] = jnp.sum(dw * dw, axis=0).reshape(1, 1, C)
    dw_ref[...] = dw[None].astype(dw_ref.dtype)        # bf16 store (halved traffic)


# --------------------------------------------------------------------------- #
# Pass 2: BatchNorm affine -> SiLU -> pointwise Conv1d(C -> D), flattened rows.
# --------------------------------------------------------------------------- #
def _stage2_kernel(dw_ref, scale_ref, shift_ref, w2_ref, o_ref):
    dw = dw_ref[...].astype(jnp.float32)                # (tM, C)
    bn = dw * scale_ref[...] + shift_ref[...]
    s = bn * jax.nn.sigmoid(bn)                         # SiLU
    out = jnp.dot(s.astype(jnp.bfloat16), w2_ref[...],
                  preferred_element_type=jnp.float32)   # (tM, D)
    o_ref[...] = out.astype(o_ref.dtype)


# --------------------------------------------------------------------------- #
# Generation-aware configuration.
# --------------------------------------------------------------------------- #
def _halo_rows(pad):
    return 8 * max(1, -(-pad // 8))


def _vmem_budget_bytes():
    cap = None
    try:
        cap = getattr(pltpu.get_tpu_info(), "vmem_capacity_bytes", None)
    except Exception:
        cap = None
    if not cap:
        return 48 * 1024 * 1024                 # conservative: fits v7x (64 MiB)
    return int(min(int(cap) * 3 // 4, 100 * 1024 * 1024))


def _pick_tT(T, D, C, K, vmem_limit, max_tT=None):
    pad = (K - 1) // 2
    H = _halo_rows(pad)
    step = 16                                   # bf16 (16,128) sublane tiling
    while step % H:
        step += 16
    per_row = 12 * D + 32 * C                   # x (2x f32) + temps + gp + dw (2x bf16)
    fixed = 2 * (D * 2 * C * 2)                 # double-buffered fused w1 (bf16)
    budget = max(vmem_limit // 2 - fixed, step * per_row)
    cap = min(budget // per_row, 512)
    if max_tT is not None:
        cap = min(cap, max_tT)
    best = None
    c = step
    while c <= min(T, cap):
        if T % c == 0:
            best = c
        c += step
    # TODO(synk): T with no multiple-of-16 divisor under the cap falls back to a
    # single whole-T tile per batch (fine for short sequences).
    return best if best is not None else T


def _pick_tM(M, D, C, vmem_limit, max_tM=None):
    if M < 16:
        return M
    per_row = 2 * 2 * C + 2 * 4 * D + 4 * (2 * C + D)   # dw 2x bf16 + out 2x f32 + temps
    fixed = 2 * (C * D * 2)                             # double-buffered w2 (bf16)
    budget = max(vmem_limit // 2 - fixed, 16 * per_row)
    cap = min(budget // per_row, 1024)
    if max_tM is not None:
        cap = min(cap, max_tM)
    best = 16
    c = 16
    while c <= min(M, cap):
        best = c
        c *= 2
    return best


# --------------------------------------------------------------------------- #
# Forward.
# --------------------------------------------------------------------------- #
@functools.partial(jax.jit, static_argnames=("tT", "tM", "vmem_limit"))
def _forward_impl(x, params, *, tT, tM, vmem_limit):
    B, T, D = x.shape
    w1 = params['w1']                                   # (2C, D) PyTorch layout
    C = w1.shape[0] // 2
    K = params['wd'].shape[1]
    pad = (K - 1) // 2
    H = _halo_rows(pad)
    assert T % tT == 0
    nT = T // tT
    tT8 = max(tT // H, 1)
    nH = -(-T // H)

    # ---- one-time weight packing (LN affine folded into the pointwise conv) ----
    ln_g = params['ln_g'].astype(jnp.float32)
    ln_b = params['ln_b'].astype(jnp.float32)
    w1f = w1.astype(jnp.float32) * ln_g[None, :]        # fold gamma into rows
    w1_t = jnp.transpose(w1f).astype(jnp.bfloat16)      # (D, 2C)
    b1 = (w1.astype(jnp.float32) @ ln_b).reshape(1, 2 * C)  # (1, 2C) f32, beta fold
    wd_kc = jnp.transpose(params['wd']).astype(jnp.float32)  # (K, C), lane-dense
    w2_t = jnp.transpose(params['w2']).astype(jnp.bfloat16)  # (C, D)

    cp1 = pltpu.CompilerParams(
        dimension_semantics=("parallel", "parallel"),
        vmem_limit_bytes=vmem_limit)
    cp2 = pltpu.CompilerParams(
        dimension_semantics=("parallel",),
        vmem_limit_bytes=vmem_limit)

    # ---------------- Pass 1 ----------------
    dw, psum, psumsq = pl.pallas_call(
        functools.partial(_stage1_kernel, nT=nT),
        out_shape=(
            jax.ShapeDtypeStruct((B, T, C), jnp.bfloat16),
            jax.ShapeDtypeStruct((B * nT, 1, C), jnp.float32),
            jax.ShapeDtypeStruct((B * nT, 1, C), jnp.float32),
        ),
        grid_spec=pltpu.PrefetchScalarGridSpec(
            num_scalar_prefetch=0,
            grid=(B, nT),
            in_specs=[
                # previous-halo rows (clamped at t == 0; contribution masked)
                pl.BlockSpec((1, H, D),
                             lambda b, t: (b, jnp.maximum(t * tT8 - 1, 0), 0)),
                # main tile
                pl.BlockSpec((1, tT, D), lambda b, t: (b, t, 0)),
                # next-halo rows (clamped at t == nT-1; contribution masked)
                pl.BlockSpec((1, H, D),
                             lambda b, t: (b, jnp.minimum((t + 1) * tT8, nH - 1), 0)),
                pl.BlockSpec((D, 2 * C), lambda b, t: (0, 0)),   # fused w1
                pl.BlockSpec((1, 2 * C), lambda b, t: (0, 0)),   # folded LN bias
                pl.BlockSpec((K, C), lambda b, t: (0, 0)),       # depthwise weight
            ],
            out_specs=(
                pl.BlockSpec((1, tT, C), lambda b, t: (b, t, 0)),          # dw bf16
                pl.BlockSpec((1, 1, C), lambda b, t: (b * nT + t, 0, 0)),  # psum
                pl.BlockSpec((1, 1, C), lambda b, t: (b * nT + t, 0, 0)),  # psumsq
            ),
            scratch_shapes=[pltpu.VMEM((tT + 2 * pad, C), jnp.float32)],
        ),
        compiler_params=cp1,
    )(x, x, x, w1_t, b1, wd_kc)

    # ---- exact global BatchNorm statistics over (B, T), training-mode biased var
    n = jnp.float32(B * T)
    total = jnp.sum(psum[:, 0, :], axis=0)              # (C,)
    total_sq = jnp.sum(psumsq[:, 0, :], axis=0)         # (C,)
    mean = total / n
    var = jnp.maximum(total_sq / n - mean * mean, 0.0)
    inv = jax.lax.rsqrt(var + BN_EPS)
    bn_g = params['bn_g'].astype(jnp.float32)
    bn_b = params['bn_b'].astype(jnp.float32)
    scale = (bn_g * inv).reshape(1, C)
    shift = (bn_b - mean * bn_g * inv).reshape(1, C)

    # ---------------- Pass 2 ----------------
    M = B * T
    dw2 = dw.reshape(M, C)
    y = pl.pallas_call(
        _stage2_kernel,
        out_shape=jax.ShapeDtypeStruct((M, D), x.dtype),
        grid_spec=pltpu.PrefetchScalarGridSpec(
            num_scalar_prefetch=0,
            grid=(pl.cdiv(M, tM),),
            in_specs=[
                pl.BlockSpec((tM, C), lambda i: (i, 0)),        # dw rows (bf16)
                pl.BlockSpec((1, C), lambda i: (0, 0)),         # BN scale
                pl.BlockSpec((1, C), lambda i: (0, 0)),         # BN shift
                pl.BlockSpec((C, D), lambda i: (0, 0)),         # w2
            ],
            out_specs=pl.BlockSpec((tM, D), lambda i: (i, 0)),
        ),
        compiler_params=cp2,
    )(dw2, scale, shift, w2_t)

    # Dropout(p=0.0) is the identity.
    return y.reshape(B, T, D)


def conv_module_forward(x, params, *, max_tT=None, max_tM=None):
    """x: (B, T, D) float32. Returns (B, T, D)."""
    B, T, D = x.shape
    C = params['w1'].shape[0] // 2
    K = params['wd'].shape[1]
    assert K % 2 == 1, "depthwise_kernel_size must be odd for SAME padding"
    vmem_limit = _vmem_budget_bytes()
    tT = _pick_tT(T, D, C, K, vmem_limit, max_tT)
    tM = _pick_tM(B * T, D, C, vmem_limit, max_tM)
    return _forward_impl(x, params, tT=tT, tM=tM, vmem_limit=vmem_limit)


# --------------------------------------------------------------------------- #
# Pure-JAX reference (f32) of the same math, PyTorch weight layouts.
# --------------------------------------------------------------------------- #
def _reference_forward(x, p):
    mu = jnp.mean(x, axis=-1, keepdims=True)
    var = jnp.mean((x - mu) ** 2, axis=-1, keepdims=True)
    xn = (x - mu) / jnp.sqrt(var + LN_EPS) * p['ln_g'] + p['ln_b']
    h = jnp.einsum('btd,od->bto', xn, p['w1'])
    C, K = p['wd'].shape
    g = h[..., :C] * jax.nn.sigmoid(h[..., C:])
    pad = (K - 1) // 2
    gp = jnp.pad(g, ((0, 0), (pad, pad), (0, 0)))
    T = x.shape[1]
    dw = sum(gp[:, k:k + T, :] * p['wd'][:, k][None, None, :] for k in range(K))
    m = jnp.mean(dw, axis=(0, 1), keepdims=True)
    v = jnp.mean((dw - m) ** 2, axis=(0, 1), keepdims=True)
    bn = (dw - m) / jnp.sqrt(v + BN_EPS) * p['bn_g'] + p['bn_b']
    s = bn * jax.nn.sigmoid(bn)
    return jnp.einsum('btc,dc->btd', s, p['w2'])


def make_params(key, input_dim, num_channels, depthwise_kernel_size):
    D, C, K = input_dim, num_channels, depthwise_kernel_size
    k1, k2, k3, k4, k5, k6, k7 = jax.random.split(key, 7)
    return {
        # LayerNorm affine (randomized to exercise the weight-folding path)
        'ln_g': 1.0 + 0.1 * jax.random.normal(k4, (D,), jnp.float32),
        'ln_b': 0.1 * jax.random.normal(k5, (D,), jnp.float32),
        # Conv1d(D, 2C, k=1), bias=False -> weight (2C, D, 1) squeezed to (2C, D)
        'w1': 0.1 * jax.random.normal(k1, (2 * C, D), jnp.float32),
        # depthwise Conv1d(C, C, k=K, groups=C) -> weight (C, 1, K) -> (C, K)
        'wd': 0.1 * jax.random.normal(k2, (C, K), jnp.float32),
        # BatchNorm1d affine
        'bn_g': 1.0 + 0.1 * jax.random.normal(k6, (C,), jnp.float32),
        'bn_b': 0.1 * jax.random.normal(k7, (C,), jnp.float32),
        # Conv1d(C, D, k=1), bias=False -> weight (D, C)
        'w2': 0.1 * jax.random.normal(k3, (D, C), jnp.float32),
    }


if __name__ == "__main__":
    # Small but lane-aligned shapes (D = C = 128 keeps loads/stores lane-dense).
    B, T = 2, 128
    input_dim, num_channels, depthwise_kernel_size = 128, 128, 7

    key = jax.random.PRNGKey(0)
    kx, kp = jax.random.split(key)
    x = jax.random.normal(kx, (B, T, input_dim), jnp.float32)
    params = make_params(kp, input_dim, num_channels, depthwise_kernel_size)

    ref = _reference_forward(x, params)

    # Default (auto-sized) tiling.
    out = jax.block_until_ready(conv_module_forward(x, params))
    assert out.shape == (B, T, input_dim)
    err = float(jnp.max(jnp.abs(out - ref)))
    # bf16 MXU operands + bf16 dw intermediate -> loosened tolerance vs f32 ref.
    assert jnp.allclose(out, ref, atol=5e-2, rtol=5e-2), f"default tiling mismatch, max|err|={err}"

    # Force the halo-tiled T path (nT > 1) and a short pass-2 row tile.
    out2 = jax.block_until_ready(conv_module_forward(x, params, max_tT=32, max_tM=64))
    err2 = float(jnp.max(jnp.abs(out2 - ref)))
    assert jnp.allclose(out2, ref, atol=5e-2, rtol=5e-2), f"halo tiling mismatch, max|err|={err2}"

    # TODO(synk): Dropout is identity at p=0.0; a nonzero rate would use
    # pltpu.prng_seed / pltpu.prng_random_bits inside pass 2.
    print("KERNEL_OK")
</pallas_src>

<mosaic_0001>
module attributes {stable_mosaic.version = 11 : i64} {
  func.func @_stage2_kernel(%arg0: i32, %arg1: memref<256x128xbf16, #tpu.memory_space<vmem>>, %arg2: memref<1x128xf32, #tpu.memory_space<vmem>>, %arg3: memref<1x128xf32, #tpu.memory_space<vmem>>, %arg4: memref<128x128xbf16, #tpu.memory_space<vmem>>, %arg5: memref<256x128xf32, #tpu.memory_space<vmem>>) attributes {dimension_semantics = [#tpu.dimension_semantics<parallel>], iteration_bounds = array<i64: 1>, scalar_prefetch = 0 : i64, scratch_operands = 0 : i64, tpu.core_type = #tpu.core_type<tc>, window_params = [{transform_indices = @transform_0, window_bounds = array<i64: 256, 128>}, {pipeline_mode = #tpu.pipeline_mode<synchronous>, transform_indices = @transform_1, window_bounds = array<i64: 1, 128>}, {pipeline_mode = #tpu.pipeline_mode<synchronous>, transform_indices = @transform_2, window_bounds = array<i64: 1, 128>}, {pipeline_mode = #tpu.pipeline_mode<synchronous>, transform_indices = @transform_3, window_bounds = array<i64: 128, 128>}, {transform_indices = @transform_4, window_bounds = array<i64: 256, 128>}]} {
    %c0 = arith.constant 0 : index
    %c0_0 = arith.constant 0 : index
    %0 = vector.load %arg1[%c0, %c0_0] : memref<256x128xbf16, #tpu.memory_space<vmem>>, vector<256x128xbf16>
    %1 = arith.extf %0 : vector<256x128xbf16> to vector<256x128xf32>
    %c0_1 = arith.constant 0 : index
    %c0_2 = arith.constant 0 : index
    %2 = vector.load %arg2[%c0_1, %c0_2] : memref<1x128xf32, #tpu.memory_space<vmem>>, vector<1x128xf32>
    %3 = vector.broadcast %2 : vector<1x128xf32> to vector<256x128xf32>
    %4 = arith.mulf %1, %3 : vector<256x128xf32>
    %c0_3 = arith.constant 0 : index
    %c0_4 = arith.constant 0 : index
    %5 = vector.load %arg3[%c0_3, %c0_4] : memref<1x128xf32, #tpu.memory_space<vmem>>, vector<1x128xf32>
    %6 = vector.broadcast %5 : vector<1x128xf32> to vector<256x128xf32>
    %7 = arith.addf %4, %6 : vector<256x128xf32>
    %8 = arith.negf %7 : vector<256x128xf32>
    %9 = math.exp %8 : vector<256x128xf32>
    %cst = arith.constant 1.000000e+00 : f32
    %10 = vector.broadcast %cst : f32 to vector<256x128xf32>
    %11 = arith.addf %10, %9 : vector<256x128xf32>
    %12 = arith.divf %10, %11 : vector<256x128xf32>
    %13 = arith.mulf %7, %12 : vector<256x128xf32>
    %14 = arith.truncf %13 : vector<256x128xf32> to vector<256x128xbf16>
    %c0_5 = arith.constant 0 : index
    %c0_6 = arith.constant 0 : index
    %15 = vector.load %arg4[%c0_5, %c0_6] : memref<128x128xbf16, #tpu.memory_space<vmem>>, vector<128x128xbf16>
    %cst_7 = arith.constant dense<0.000000e+00> : vector<256x128xf32>
    %16 = tpu.matmul %14, %15, %cst_7 {dimension_numbers = #tpu.dot_dimension_numbers<[1], [0], [0], [1], [0, 0, 1, 1], [], []>} : vector<256x128xbf16>, vector<128x128xbf16>, vector<256x128xf32> -> vector<256x128xf32>
    %c0_8 = arith.constant 0 : index
    %c0_9 = arith.constant 0 : index
    %17 = vector.load %arg5[%c0_8, %c0_9] : memref<256x128xf32, #tpu.memory_space<vmem>>, vector<256x128xf32>
    tpu.vector_store %arg5[%c0_8, %c0_9], %16 {strides = array<i32>} : memref<256x128xf32, #tpu.memory_space<vmem>>, vector<256x128xf32>,
    return
  }
  func.func @transform_0(%arg0: i32) -> (i32, i32) {
    %c0_i32 = arith.constant 0 : i32
    %c0_i32_0 = arith.constant 0 : i32
    return %arg0, %c0_i32 : i32, i32
  }
  func.func @transform_1(%arg0: i32) -> (i32, i32) {
    %c0_i32 = arith.constant 0 : i32
    %c0_i32_0 = arith.constant 0 : i32
    %c0_i32_1 = arith.constant 0 : i32
    return %c0_i32, %c0_i32_0 : i32, i32
  }
  func.func @transform_2(%arg0: i32) -> (i32, i32) {
    %c0_i32 = arith.constant 0 : i32
    %c0_i32_0 = arith.constant 0 : i32
    %c0_i32_1 = arith.constant 0 : i32
    return %c0_i32, %c0_i32_0 : i32, i32
  }
  func.func @transform_3(%arg0: i32) -> (i32, i32) {
    %c0_i32 = arith.constant 0 : i32
    %c0_i32_0 = arith.constant 0 : i32
    %c0_i32_1 = arith.constant 0 : i32
    return %c0_i32, %c0_i32_0 : i32, i32
  }
  func.func @transform_4(%arg0: i32) -> (i32, i32) {
    %c0_i32 = arith.constant 0 : i32
    %c0_i32_0 = arith.constant 0 : i32
    return %arg0, %c0_i32 : i32, i32
  }
}

module attributes {stable_mosaic.version = 11 : i64} {
  func.func @_stage1_kernel(%arg0: i32, %arg1: i32, %arg2: memref<1x8x128xf32, #tpu.memory_space<vmem>>, %arg3: memref<1x128x128xf32, #tpu.memory_space<vmem>>, %arg4: memref<1x8x128xf32, #tpu.memory_space<vmem>>, %arg5: memref<128x256xbf16, #tpu.memory_space<vmem>>, %arg6: memref<1x256xf32, #tpu.memory_space<vmem>>, %arg7: memref<7x128xf32, #tpu.memory_space<vmem>>, %arg8: memref<1x128x128xbf16, #tpu.memory_space<vmem>>, %arg9: memref<1x1x128xf32, #tpu.memory_space<vmem>>, %arg10: memref<1x1x128xf32, #tpu.memory_space<vmem>>, %arg11: memref<134x128xf32, #tpu.memory_space<vmem>>) attributes {dimension_semantics = [#tpu.dimension_semantics<parallel>, #tpu.dimension_semantics<parallel>], iteration_bounds = array<i64: 2, 1>, scalar_prefetch = 0 : i64, scratch_operands = 1 : i64, tpu.core_type = #tpu.core_type<tc>, window_params = [{transform_indices = @transform_0, window_bounds = array<i64: 1, 8, 128>}, {transform_indices = @transform_1, window_bounds = array<i64: 1, 128, 128>}, {transform_indices = @transform_2, window_bounds = array<i64: 1, 8, 128>}, {pipeline_mode = #tpu.pipeline_mode<synchronous>, transform_indices = @transform_3, window_bounds = array<i64: 128, 256>}, {pipeline_mode = #tpu.pipeline_mode<synchronous>, transform_indices = @transform_4, window_bounds = array<i64: 1, 256>}, {pipeline_mode = #tpu.pipeline_mode<synchronous>, transform_indices = @transform_5, window_bounds = array<i64: 7, 128>}, {transform_indices = @transform_6, window_bounds = array<i64: 1, 128, 128>}, {transform_indices = @transform_7, window_bounds = array<i64: 1, 1, 128>}, {transform_indices = @transform_8, window_bounds = array<i64: 1, 1, 128>}]} {
    %c0 = arith.constant 0 : index
    %c0_0 = arith.constant 0 : index
    %0 = vector.load %arg5[%c0, %c0_0] : memref<128x256xbf16, #tpu.memory_space<vmem>>, vector<128x256xbf16>
    %c0_1 = arith.constant 0 : index
    %c0_2 = arith.constant 0 : index
    %1 = vector.load %arg6[%c0_1, %c0_2] : memref<1x256xf32, #tpu.memory_space<vmem>>, vector<1x256xf32>
    %c0_3 = arith.constant 0 : index
    %c0_4 = arith.constant 0 : index
    %2 = vector.load %arg7[%c0_3, %c0_4] : memref<7x128xf32, #tpu.memory_space<vmem>>, vector<7x128xf32>
    %c0_5 = arith.constant 0 : index
    %c0_6 = arith.constant 0 : index
    %c0_7 = arith.constant 0 : index
    %3 = vector.load %arg3[%c0_5, %c0_6, %c0_7] : memref<1x128x128xf32, #tpu.memory_space<vmem>>, vector<1x128x128xf32>
    %4 = vector.shape_cast %3 : vector<1x128x128xf32> to vector<128x128xf32>
    %cst = arith.constant dense<0.000000e+00> : vector<128xf32>
    %5 = vector.multi_reduction <add>, %4, %cst [1] : vector<128x128xf32> to vector<128xf32>
    %6 = vector.shape_cast %5 : vector<128xf32> to vector<128x1xf32>
    %7 = arith.mulf %4, %4 : vector<128x128xf32>
    %cst_8 = arith.constant dense<0.000000e+00> : vector<128xf32>
    %8 = vector.multi_reduction <add>, %7, %cst_8 [1] : vector<128x128xf32> to vector<128xf32>
    %9 = vector.shape_cast %8 : vector<128xf32> to vector<128x1xf32>
    %cst_9 = arith.constant 1.280000e+02 : f32
    %10 = vector.broadcast %cst_9 : f32 to vector<128x1xf32>
    %11 = arith.divf %6, %10 : vector<128x1xf32>
    %cst_10 = arith.constant 1.280000e+02 : f32
    %12 = vector.broadcast %cst_10 : f32 to vector<128x1xf32>
    %13 = arith.divf %9, %12 : vector<128x1xf32>
    %14 = arith.mulf %11, %11 : vector<128x1xf32>
    %15 = arith.subf %13, %14 : vector<128x1xf32>
    %cst_11 = arith.constant 0.000000e+00 : f32
    %16 = vector.broadcast %cst_11 : f32 to vector<128x1xf32>
    %17 = arith.maximumf %15, %16 : vector<128x1xf32>
    %18 = vector.broadcast %11 : vector<128x1xf32> to vector<128x128xf32>
    %19 = arith.subf %4, %18 : vector<128x128xf32>
    %cst_12 = arith.constant 9.99999974E-6 : f32
    %20 = vector.broadcast %cst_12 : f32 to vector<128x1xf32>
    %21 = arith.addf %17, %20 : vector<128x1xf32>
    %22 = math.rsqrt %21 : vector<128x1xf32>
    %23 = vector.broadcast %22 : vector<128x1xf32> to vector<128x128xf32>
    %24 = arith.mulf %19, %23 : vector<128x128xf32>
    %25 = arith.truncf %24 : vector<128x128xf32> to vector<128x128xbf16>
    %cst_13 = arith.constant dense<0.000000e+00> : vector<128x256xf32>
    %26 = tpu.matmul %25, %0, %cst_13 {dimension_numbers = #tpu.dot_dimension_numbers<[1], [0], [0], [1], [0, 0, 1, 1], [], []>} : vector<128x128xbf16>, vector<128x256xbf16>, vector<128x256xf32> -> vector<128x256xf32>
    %27 = vector.broadcast %1 : vector<1x256xf32> to vector<128x256xf32>
    %28 = arith.addf %26, %27 : vector<128x256xf32>
    %29 = vector.extract_strided_slice %28 {offsets = [0, 0], sizes = [128, 128], strides = [1, 1]} : vector<128x256xf32> to vector<128x128xf32>
    %30 = vector.extract_strided_slice %28 {offsets = [0, 128], sizes = [128, 128], strides = [1, 1]} : vector<128x256xf32> to vector<128x128xf32>
    %31 = arith.negf %30 : vector<128x128xf32>
    %32 = math.exp %31 : vector<128x128xf32>
    %cst_14 = arith.constant 1.000000e+00 : f32
    %33 = vector.broadcast %cst_14 : f32 to vector<128x128xf32>
    %34 = arith.addf %33, %32 : vector<128x128xf32>
    %35 = arith.divf %33, %34 : vector<128x128xf32>
    %36 = arith.mulf %29, %35 : vector<128x128xf32>
    %c3 = arith.constant 3 : index
    %c0_15 = arith.constant 0 : index
    %37 = vector.load %arg11[%c3, %c0_15] : memref<134x128xf32, #tpu.memory_space<vmem>>, vector<128x128xf32>
    tpu.vector_store %arg11[%c3, %c0_15], %36 {strides = array<i32>} : memref<134x128xf32, #tpu.memory_space<vmem>>, vector<128x128xf32>,
    %cst_16 = arith.constant 0.000000e+00 : f32
    %38 = vector.broadcast %cst_16 : f32 to vector<3x128xf32>
    %c0_17 = arith.constant 0 : index
    %c0_18 = arith.constant 0 : index
    %39 = vector.load %arg11[%c0_17, %c0_18] : memref<134x128xf32, #tpu.memory_space<vmem>>, vector<3x128xf32>
    tpu.vector_store %arg11[%c0_17, %c0_18], %38 {strides = array<i32>} : memref<134x128xf32, #tpu.memory_space<vmem>>, vector<3x128xf32>,
    %cst_19 = arith.constant 0.000000e+00 : f32
    %40 = vector.broadcast %cst_19 : f32 to vector<3x128xf32>
    %c131 = arith.constant 131 : index
    %c0_20 = arith.constant 0 : index
    %41 = vector.load %arg11[%c131, %c0_20] : memref<134x128xf32, #tpu.memory_space<vmem>>, vector<3x128xf32>
    tpu.vector_store %arg11[%c131, %c0_20], %40 {strides = array<i32>} : memref<134x128xf32, #tpu.memory_space<vmem>>, vector<3x128xf32>,
    %c0_21 = arith.constant 0 : index
    %c0_22 = arith.constant 0 : index
    %42 = vector.load %arg11[%c0_21, %c0_22] : memref<134x128xf32, #tpu.memory_space<vmem>>, vector<128x128xf32>
    %43 = vector.extract_strided_slice %2 {offsets = [0, 0], sizes = [1, 128], strides = [1, 1]} : vector<7x128xf32> to vector<1x128xf32>
    %44 = vector.shape_cast %43 : vector<1x128xf32> to vector<128xf32>
    %45 = vector.shape_cast %44 : vector<128xf32> to vector<1x128xf32>
    %46 = vector.broadcast %45 : vector<1x128xf32> to vector<128x128xf32>
    %47 = arith.mulf %42, %46 : vector<128x128xf32>
    %c1 = arith.constant 1 : index
    %c0_23 = arith.constant 0 : index
    %48 = vector.load %arg11[%c1, %c0_23] : memref<134x128xf32, #tpu.memory_space<vmem>>, vector<128x128xf32>
    %49 = vector.extract_strided_slice %2 {offsets = [1, 0], sizes = [1, 128], strides = [1, 1]} : vector<7x128xf32> to vector<1x128xf32>
    %50 = vector.shape_cast %49 : vector<1x128xf32> to vector<128xf32>
    %51 = vector.shape_cast %50 : vector<128xf32> to vector<1x128xf32>
    %52 = vector.broadcast %51 : vector<1x128xf32> to vector<128x128xf32>
    %53 = arith.mulf %48, %52 : vector<128x128xf32>
    %54 = arith.addf %47, %53 : vector<128x128xf32>
    %c2 = arith.constant 2 : index
    %c0_24 = arith.constant 0 : index
    %55 = vector.load %arg11[%c2, %c0_24] : memref<134x128xf32, #tpu.memory_space<vmem>>, vector<128x128xf32>
    %56 = vector.extract_strided_slice %2 {offsets = [2, 0], sizes = [1, 128], strides = [1, 1]} : vector<7x128xf32> to vector<1x128xf32>
    %57 = vector.shape_cast %56 : vector<1x128xf32> to vector<128xf32>
    %58 = vector.shape_cast %57 : vector<128xf32> to vector<1x128xf32>
    %59 = vector.broadcast %58 : vector<1x128xf32> to vector<128x128xf32>
    %60 = arith.mulf %55, %59 : vector<128x128xf32>
    %61 = arith.addf %54, %60 : vector<128x128xf32>
    %c3_25 = arith.constant 3 : index
    %c0_26 = arith.constant 0 : index
    %62 = vector.load %arg11[%c3_25, %c0_26] : memref<134x128xf32, #tpu.memory_space<vmem>>, vector<128x128xf32>
    %63 = vector.extract_strided_slice %2 {offsets = [3, 0], sizes = [1, 128], strides = [1, 1]} : vector<7x128xf32> to vector<1x128xf32>
    %64 = vector.shape_cast %63 : vector<1x128xf32> to vector<128xf32>
    %65 = vector.shape_cast %64 : vector<128xf32> to vector<1x128xf32>
    %66 = vector.broadcast %65 : vector<1x128xf32> to vector<128x128xf32>
    %67 = arith.mulf %62, %66 : vector<128x128xf32>
    %68 = arith.addf %61, %67 : vector<128x128xf32>
    %c4 = arith.constant 4 : index
    %c0_27 = arith.constant 0 : index
    %69 = vector.load %arg11[%c4, %c0_27] : memref<134x128xf32, #tpu.memory_space<vmem>>, vector<128x128xf32>
    %70 = vector.extract_strided_slice %2 {offsets = [4, 0], sizes = [1, 128], strides = [1, 1]} : vector<7x128xf32> to vector<1x128xf32>
    %71 = vector.shape_cast %70 : vector<1x128xf32> to vector<128xf32>
    %72 = vector.shape_cast %71 : vector<128xf32> to vector<1x128xf32>
    %73 = vector.broadcast %72 : vector<1x128xf32> to vector<128x128xf32>
    %74 = arith.mulf %69, %73 : vector<128x128xf32>
    %75 = arith.addf %68, %74 : vector<128x128xf32>
    %c5 = arith.constant 5 : index
    %c0_28 = arith.constant 0 : index
    %76 = vector.load %arg11[%c5, %c0_28] : memref<134x128xf32, #tpu.memory_space<vmem>>, vector<128x128xf32>
    %77 = vector.extract_strided_slice %2 {offsets = [5, 0], sizes = [1, 128], strides = [1, 1]} : vector<7x128xf32> to vector<1x128xf32>
    %78 = vector.shape_cast %77 : vector<1x128xf32> to vector<128xf32>
    %79 = vector.shape_cast %78 : vector<128xf32> to vector<1x128xf32>
    %80 = vector.broadcast %79 : vector<1x128xf32> to vector<128x128xf32>
    %81 = arith.mulf %76, %80 : vector<128x128xf32>
    %82 = arith.addf %75, %81 : vector<128x128xf32>
    %c6 = arith.constant 6 : index
    %c0_29 = arith.constant 0 : index
    %83 = vector.load %arg11[%c6, %c0_29] : memref<134x128xf32, #tpu.memory_space<vmem>>, vector<128x128xf32>
    %84 = vector.extract_strided_slice %2 {offsets = [6, 0], sizes = [1, 128], strides = [1, 1]} : vector<7x128xf32> to vector<1x128xf32>
    %85 = vector.shape_cast %84 : vector<1x128xf32> to vector<128xf32>
    %86 = vector.shape_cast %85 : vector<128xf32> to vector<1x128xf32>
    %87 = vector.broadcast %86 : vector<1x128xf32> to vector<128x128xf32>
    %88 = arith.mulf %83, %87 : vector<128x128xf32>
    %89 = arith.addf %82, %88 : vector<128x128xf32>
    %cst_30 = arith.constant dense<0.000000e+00> : vector<128xf32>
    %90 = vector.multi_reduction <add>, %89, %cst_30 [0] : vector<128x128xf32> to vector<128xf32>
    %91 = vector.shape_cast %90 : vector<128xf32> to vector<1x1x128xf32>
    %c0_31 = arith.constant 0 : index
    %c0_32 = arith.constant 0 : index
    %c0_33 = arith.constant 0 : index
    %92 = vector.load %arg9[%c0_31, %c0_32, %c0_33] : memref<1x1x128xf32, #tpu.memory_space<vmem>>, vector<1x1x128xf32>
    tpu.vector_store %arg9[%c0_31, %c0_32, %c0_33], %91 {strides = array<i32>} : memref<1x1x128xf32, #tpu.memory_space<vmem>>, vector<1x1x128xf32>,
    %93 = arith.mulf %89, %89 : vector<128x128xf32>
    %cst_34 = arith.constant dense<0.000000e+00> : vector<128xf32>
    %94 = vector.multi_reduction <add>, %93, %cst_34 [0] : vector<128x128xf32> to vector<128xf32>
    %95 = vector.shape_cast %94 : vector<128xf32> to vector<1x1x128xf32>
    %c0_35 = arith.constant 0 : index
    %c0_36 = arith.constant 0 : index
    %c0_37 = arith.constant 0 : index
    %96 = vector.load %arg10[%c0_35, %c0_36, %c0_37] : memref<1x1x128xf32, #tpu.memory_space<vmem>>, vector<1x1x128xf32>
    tpu.vector_store %arg10[%c0_35, %c0_36, %c0_37], %95 {strides = array<i32>} : memref<1x1x128xf32, #tpu.memory_space<vmem>>, vector<1x1x128xf32>,
    %97 = vector.shape_cast %89 : vector<128x128xf32> to vector<1x128x128xf32>
    %98 = arith.truncf %97 : vector<1x128x128xf32> to vector<1x128x128xbf16>
    %c0_38 = arith.constant 0 : index
    %c0_39 = arith.constant 0 : index
    %c0_40 = arith.constant 0 : index
    %99 = vector.load %arg8[%c0_38, %c0_39, %c0_40] : memref<1x128x128xbf16, #tpu.memory_space<vmem>>, vector<1x128x128xbf16>
    tpu.vector_store %arg8[%c0_38, %c0_39, %c0_40], %98 {strides = array<i32>} : memref<1x128x128xbf16, #tpu.memory_space<vmem>>, vector<1x128x128xbf16>,
    return
  }
  func.func @transform_0(%arg0: i32, %arg1: i32) -> (i32, i32, i32) {
    %c16_i32 = arith.constant 16 : i32
    %0 = arith.muli %arg1, %c16_i32 : i32
    %c1_i32 = arith.constant 1 : i32
    %1 = arith.subi %0, %c1_i32 : i32
    %c0_i32 = arith.constant 0 : i32
    %2 = arith.maxsi %1, %c0_i32 : i32
    %c0_i32_0 = arith.constant 0 : i32
    %c0_i32_1 = arith.constant 0 : i32
    return %arg0, %2, %c0_i32_0 : i32, i32, i32
  }
  func.func @transform_1(%arg0: i32, %arg1: i32) -> (i32, i32, i32) {
    %c0_i32 = arith.constant 0 : i32
    %c0_i32_0 = arith.constant 0 : i32
    return %arg0, %arg1, %c0_i32 : i32, i32, i32
  }
  func.func @transform_2(%arg0: i32, %arg1: i32) -> (i32, i32, i32) {
    %c1_i32 = arith.constant 1 : i32
    %0 = arith.addi %arg1, %c1_i32 : i32
    %c16_i32 = arith.constant 16 : i32
    %1 = arith.muli %0, %c16_i32 : i32
    %c15_i32 = arith.constant 15 : i32
    %2 = arith.minsi %1, %c15_i32 : i32
    %c0_i32 = arith.constant 0 : i32
    %c0_i32_0 = arith.constant 0 : i32
    return %arg0, %2, %c0_i32 : i32, i32, i32
  }
  func.func @transform_3(%arg0: i32, %arg1: i32) -> (i32, i32) {
    %c0_i32 = arith.constant 0 : i32
    %c0_i32_0 = arith.constant 0 : i32
    %c0_i32_1 = arith.constant 0 : i32
    return %c0_i32, %c0_i32_0 : i32, i32
  }
  func.func @transform_4(%arg0: i32, %arg1: i32) -> (i32, i32) {
    %c0_i32 = arith.constant 0 : i32
    %c0_i32_0 = arith.constant 0 : i32
    %c0_i32_1 = arith.constant 0 : i32
    return %c0_i32, %c0_i32_0 : i32, i32
  }
  func.func @transform_5(%arg0: i32, %arg1: i32) -> (i32, i32) {
    %c0_i32 = arith.constant 0 : i32
    %c0_i32_0 = arith.constant 0 : i32
    %c0_i32_1 = arith.constant 0 : i32
    return %c0_i32, %c0_i32_0 : i32, i32
  }
  func.func @transform_6(%arg0: i32, %arg1: i32) -> (i32, i32, i32) {
    %c0_i32 = arith.constant 0 : i32
    %c0_i32_0 = arith.constant 0 : i32
    return %arg0, %arg1, %c0_i32 : i32, i32, i32
  }
  func.func @transform_7(%arg0: i32, %arg1: i32) -> (i32, i32, i32) {
    %c1_i32 = arith.constant 1 : i32
    %0 = arith.muli %arg0, %c1_i32 : i32
    %1 = arith.addi %0, %arg1 : i32
    %c0_i32 = arith.constant 0 : i32
    %c0_i32_0 = arith.constant 0 : i32
    %c0_i32_1 = arith.constant 0 : i32
    return %1, %c0_i32, %c0_i32_0 : i32, i32, i32
  }
  func.func @transform_8(%arg0: i32, %arg1: i32) -> (i32, i32, i32) {
    %c1_i32 = arith.constant 1 : i32
    %0 = arith.muli %arg0, %c1_i32 : i32
    %1 = arith.addi %0, %arg1 : i32
    %c0_i32 = arith.constant 0 : i32
    %c0_i32_0 = arith.constant 0 : i32
    %c0_i32_1 = arith.constant 0 : i32
    return %1, %c0_i32, %c0_i32_0 : i32, i32, i32
  }
}

</mosaic_0001>

<bundles_post_ra>
// kernel: _forward_impl.3
= control target key start
LH: loop header
LB: loop body
LE: loop exit
PB: predicated region body
PF: predicated region fallthrough
CT: control target
= control target key end

     0   :  { %s1369_s0 = inlined_call_operand.vmem [shape: bf16[256,128], index: 0, kind: input, shape index: {}]   ;;  %s1370_s1 = inlined_call_operand.vmem [shape: f32[1,128], index: 1, kind: input, shape index: {}]   ;;  %s1371_s2 = inlined_call_operand.vmem [shape: f32[1,128], index: 2, kind: input, shape index: {}]   ;;  %s1372_s3 = inlined_call_operand.vmem [shape: bf16[128,128], index: 3, kind: input, shape index: {}]   ;;  %s1373_s4 = inlined_call_operand.hbm [shape: f32[256,128], index: 4, kind: output, shape index: {}]  }
   0x1   :  { %v886_v0 = vld [vmem:[%s1372_s3] sm:$0xff]   ;;  %v887_v1 = vld [vmem:[%s1372_s3 + $0x8] sm:$0xff]   ;;  %v888_v2 = vld [vmem:[%s1372_s3 + $0x10] sm:$0xff]  }
   0x2   :  { %819 = vmatprep.subr.bf16.mxu0 %v886_v0  ;;  %867 = vmatprep.subr.bf16.mxu1 %v886_v0  ;;  %v889_v3 = vld [vmem:[%s1372_s3 + $0x18] sm:$0xff]   ;;  %v717_v4 = vld [vmem:[%s1369_s0] sm:$0xff]   ;;  %v780_v9 = vld [vmem:[%s1369_s0 + $0x8] sm:$0xff]  }
   0x3   :  { %820 = vmatpush3.bf16.msra.mxu0 %v886_v0  ;;  %875 = vmatpush3.bf16.msra.mxu1 %v886_v0  ;;  %v1092_v5 = vld [vmem:[%s1370_s1] ss:$0 sm:$0xff]  ;;  %v718_v6 = vunpack.c.l.bf16 %v717_v4  ;;  %v719_v7 = vunpack.c.h.bf16 %v717_v4  ;;  %v788_v10 = vld [vmem:[%s1369_s0 + $0x48] sm:$0xff]   ;;  %v722_v14 = vunpack.c.l.bf16 %v780_v9  ;;  %v723_v15 = vunpack.c.h.bf16 %v780_v9  ;;  %v781_v16 = vld [vmem:[%s1369_s0 + $0x10] sm:$0xff]  }
   0x4   :  { %821 = vmatprep.subr.bf16.mxu0 %v887_v1  ;;  %868 = vmatprep.subr.bf16.mxu1 %v887_v1  ;;  %v787_v8 = vld [vmem:[%s1369_s0 + $0x40] sm:$0xff]   ;;  %v754_v19 = vunpack.c.l.bf16 %v788_v10  ;;  %v755_v20 = vunpack.c.h.bf16 %v788_v10  ;;  %v726_v25 = vunpack.c.l.bf16 %v781_v16  ;;  %v891_v30 = vld [vmem:[%s1372_s3 + $0x28] sm:$0xff]  }
   0x5   :  { %v1106_v11 = vld [vmem:[%s1371_s2] ss:$0 sm:$0xff]  ;;  %v750_v12 = vunpack.c.l.bf16 %v787_v8  ;;  %v751_v13 = vunpack.c.h.bf16 %v787_v8  ;;  %v90_v17 = vmul.f32 %v718_v6, %v1092_v5  ;;  %v91_v18 = vmul.f32 %v719_v7, %v1092_v5 }
   0x6   :  { %v890_v21 = vld [vmem:[%s1372_s3 + $0x20] sm:$0xff]   ;;  %v92_v24 = vmul.f32 %v722_v14, %v1092_v5  ;;  %v93_v28 = vmul.f32 %v723_v15, %v1092_v5  ;;  %v108_v29 = vmul.f32 %v754_v19, %v1092_v5  ;;  %v109_v34 = vmul.f32 %v755_v20, %v1092_v5 }
   0x7   :  { %822 = vmatpush3.bf16.msra.mxu0 %v887_v1  ;;  %876 = vmatpush3.bf16.msra.mxu1 %v887_v1  ;;  %v106_v22 = vmul.f32 %v750_v12, %v1092_v5  ;;  %v107_v23 = vmul.f32 %v751_v13, %v1092_v5  ;;  %v1120_v26 = vadd.f32 %v1106_v11, %v90_v17 }
   0x8   :  { %823 = vmatprep.subr.bf16.mxu0 %v888_v2  ;;  %869 = vmatprep.subr.bf16.mxu1 %v888_v2  ;;  %v1123_v27 = vadd.f32 %v1106_v11, %v91_v18  ;;  %v1137_v33 = vadd.f32 %v1106_v11, %v92_v24 }
   0x9   :  { %v1131_v31 = vadd.f32 %v1106_v11, %v106_v22  ;;  %v1134_v32 = vadd.f32 %v1106_v11, %v107_v23 }
   0xb   :  { %824 = vmatpush3.bf16.msra.mxu0 %v888_v2  ;;  %877 = vmatpush3.bf16.msra.mxu1 %v888_v2 }
   0xc   :  { %825 = vmatprep.subr.bf16.mxu0 %v889_v3  ;;  %870 = vmatprep.subr.bf16.mxu1 %v889_v3 }
   0xd   :  { %9 = vsyncpa [#allocation3], 0  ;;  %v676_v35 = vmul.f32 -1.442695, %v1120_v26  ;;  %v677_v36 = vmul.f32 -1.442695, %v1123_v27  ;;  %v1143_v37 = vadd.f32 %v1106_v11, %v93_v28  ;;  %v1146_v38 = vadd.f32 %v1106_v11, %v108_v29 }
   0xe   :  { %v789_v39 = vld [vmem:[%s1369_s0 + $0x50] sm:$0xff]   ;;  %v782_v40 = vld [vmem:[%s1369_s0 + $0x18] sm:$0xff]   ;;  %v692_v41 = vmul.f32 -1.442695, %v1131_v31  ;;  %v693_v42 = vmul.f32 -1.442695, %v1134_v32  ;;  %v1158_v44 = vadd.f32 %v1106_v11, %v109_v34  ;;  %v727_v47 = vunpack.c.h.bf16 %v781_v16 }
   0xf   :  { %826 = vmatpush3.bf16.msra.mxu0 %v889_v3  ;;  %878 = vmatpush3.bf16.msra.mxu1 %v889_v3  ;;  %v678_v43 = vmul.f32 -1.442695, %v1137_v33  ;;  %894 = vpow2.f32 %v676_v35  ;;  %v679_v45 = vmul.f32 -1.442695, %v1143_v37  ;;  %v694_v46 = vmul.f32 -1.442695, %v1146_v38 }
  0x10   :  { %827 = vmatprep.subr.bf16.mxu0 %v890_v21  ;;  %871 = vmatprep.subr.bf16.mxu1 %v890_v21  ;;  %896 = vpow2.f32 %v677_v36  ;;  %v695_v48 = vmul.f32 -1.442695, %v1158_v44  ;;  %v94_v49 = vmul.f32 %v726_v25, %v1092_v5  ;;  %v758_v50 = vunpack.c.l.bf16 %v789_v39  ;;  %v892_v54 = vld [vmem:[%s1372_s3 + $0x30] sm:$0xff]   ;;  %v790_v61 = vld [vmem:[%s1369_s0 + $0x58] sm:$0xff]   ;;  %v783_v4 = vld [vmem:[%s1369_s0 + $0x20] sm:$0xff]  }
  0x11   :  { %898 = vpow2.f32 %v692_v41  ;;  %v95_v51 = vmul.f32 %v727_v47, %v1092_v5  ;;  %v759_v52 = vunpack.c.h.bf16 %v789_v39  ;;  %v730_v53 = vunpack.c.l.bf16 %v782_v40  ;;  %v893_v6 = vld [vmem:[%s1372_s3 + $0x38] sm:$0xff]   ;;  %v791_v9 = vld [vmem:[%s1369_s0 + $0x60] sm:$0xff]  }
  0x12   :  { %900 = vpow2.f32 %v693_v42  ;;  %v1169_v55 = vadd.f32 %v1106_v11, %v94_v49  ;;  %v110_v56 = vmul.f32 %v758_v50, %v1092_v5  ;;  %v731_v57 = vunpack.c.h.bf16 %v782_v40 }
  0x13   :  { %828 = vmatpush3.bf16.msra.mxu0 %v890_v21  ;;  %879 = vmatpush3.bf16.msra.mxu1 %v890_v21  ;;  %902 = vpow2.f32 %v678_v43  ;;  %v1173_v58 = vadd.f32 %v1106_v11, %v95_v51  ;;  %v111_v59 = vmul.f32 %v759_v52, %v1092_v5  ;;  %v96_v60 = vmul.f32 %v730_v53, %v1092_v5  ;;  %v784_v43 = vld [vmem:[%s1369_s0 + $0x28] sm:$0xff]  }
  0x14   :  { %829 = vmatprep.subr.bf16.mxu0 %v891_v30  ;;  %872 = vmatprep.subr.bf16.mxu1 %v891_v30  ;;  %904 = vpow2.f32 %v679_v45  ;;  %v680_v62 = vmul.f32 -1.442695, %v1169_v55  ;;  %v1182_v63 = vadd.f32 %v1106_v11, %v110_v56  ;;  %v97_v0 = vmul.f32 %v731_v57, %v1092_v5 }
  0x15   :  { %906 = vpow2.f32 %v694_v46  ;;  %v681_v1 = vmul.f32 -1.442695, %v1173_v58  ;;  %v1187_v2 = vadd.f32 %v1106_v11, %v111_v59  ;;  %v1190_v3 = vadd.f32 %v1106_v11, %v96_v60 }
  0x16   :  { %908 = vpow2.f32 %v695_v48  ;;  %v696_v7 = vmul.f32 -1.442695, %v1182_v63  ;;  %v762_v8 = vunpack.c.l.bf16 %v790_v61  ;;  %v763_v13 = vunpack.c.h.bf16 %v790_v61 }
  0x17   :  { %830 = vmatpush3.bf16.msra.mxu0 %v891_v30  ;;  %880 = vmatpush3.bf16.msra.mxu1 %v891_v30  ;;  %910 = vpow2.f32 %v680_v62  ;;  %v697_v10 = vmul.f32 -1.442695, %v1187_v2  ;;  %v682_v12 = vmul.f32 -1.442695, %v1190_v3  ;;  %v1205_v14 = vadd.f32 %v1106_v11, %v97_v0 }
  0x18   :  { %831 = vmatprep.subr.bf16.mxu0 %v892_v54  ;;  %873 = vmatprep.subr.bf16.mxu1 %v892_v54  ;;  %912 = vpow2.f32 %v681_v1  ;;  %v112_v15 = vmul.f32 %v762_v8, %v1092_v5  ;;  %v734_v16 = vunpack.c.l.bf16 %v783_v4  ;;  %v113_v18 = vmul.f32 %v763_v13, %v1092_v5 }
  0x19   :  { %v895_v17 = vpop.eup %894  ;;  %914 = vpow2.f32 %v696_v7  ;;  %v735_v19 = vunpack.c.h.bf16 %v783_v4  ;;  %v766_v20 = vunpack.c.l.bf16 %v791_v9  ;;  %v1218_v36 = vmul.f32 -1.442695, %v1205_v14  ;;  %v792_v7 = vld [vmem:[%s1369_s0 + $0x68] sm:$0xff]  }
  0x1a   :  { %v897_v21 = vpop.eup %896  ;;  %v257_v22 = vadd.f32 1.0, %v895_v17  ;;  %916 = vpow2.f32 %v697_v10  ;;  %v1210_v23 = vadd.f32 %v1106_v11, %v112_v15  ;;  %v98_v24 = vmul.f32 %v734_v16, %v1092_v5 }
  0x1b   :  { %832 = vmatpush3.bf16.msra.mxu0 %v892_v54  ;;  %881 = vmatpush3.bf16.msra.mxu1 %v892_v54  ;;  %v899_v25 = vpop.eup %898  ;;  %v258_v28 = vadd.f32 1.0, %v897_v21  ;;  %918 = vpow2.f32 %v682_v12  ;;  %v1214_v29 = vadd.f32 %v1106_v11, %v113_v18  ;;  %v99_v30 = vmul.f32 %v735_v19, %v1092_v5 }
  0x1c   :  { %833 = vmatprep.subr.bf16.mxu0 %v893_v6  ;;  %874 = vmatprep.subr.bf16.mxu1 %v893_v6  ;;  %v901_v34 = vpop.eup %900  ;;  %920 = vrcp.f32 %v257_v22  ;;  %v273_v35 = vadd.f32 1.0, %v899_v25  ;;  %v1221_v41 = vmul.f32 -1.442695, %v1210_v23  ;;  %v1224_v42 = vadd.f32 %v1106_v11, %v98_v24  ;;  %v785_v22 = vld [vmem:[%s1369_s0 + $0x30] sm:$0xff]  }
  0x1d   :  { %v903_v39 = vpop.eup %902  ;;  %922 = vrcp.f32 %v258_v28  ;;  %v274_v40 = vadd.f32 1.0, %v901_v34  ;;  %v1230_v47 = vmul.f32 -1.442695, %v1214_v29  ;;  %v767_v48 = vunpack.c.h.bf16 %v791_v9 }
  0x1e   :  { %v905_v45 = vpop.eup %904  ;;  %924 = vrcp.f32 %v273_v35  ;;  %v259_v46 = vadd.f32 1.0, %v903_v39  ;;  %v1233_v51 = vadd.f32 %v1106_v11, %v99_v30  ;;  %v114_v52 = vmul.f32 %v766_v20, %v1092_v5 }
  0x1f   :  { %834 = vmatpush3.bf16.msra.mxu0 %v893_v6  ;;  %882 = vmatpush3.bf16.msra.mxu1 %v893_v6  ;;  %v907_v49 = vpop.eup %906  ;;  %926 = vrcp.f32 %v274_v40  ;;  %v260_v50 = vadd.f32 1.0, %v905_v45  ;;  %v115_v56 = vmul.f32 %v767_v48, %v1092_v5  ;;  %v738_v57 = vunpack.c.l.bf16 %v784_v43 }
  0x20   :  { %v909_v53 = vpop.eup %908  ;;  %928 = vrcp.f32 %v259_v46  ;;  %v275_v54 = vadd.f32 1.0, %v907_v49  ;;  %v1238_v61 = vadd.f32 %v1106_v11, %v114_v52  ;;  %v739_v62 = vunpack.c.h.bf16 %v784_v43 }
  0x21   :  { %v911_v59 = vpop.eup %910  ;;  %930 = vrcp.f32 %v260_v50  ;;  %v276_v60 = vadd.f32 1.0, %v909_v53  ;;  %v1241_v4 = vadd.f32 %v1106_v11, %v115_v56  ;;  %v100_v6 = vmul.f32 %v738_v57, %v1092_v5 }
  0x22   :  { %v913_v0 = vpop.eup %912  ;;  %932 = vrcp.f32 %v275_v54  ;;  %v261_v1 = vadd.f32 1.0, %v911_v59  ;;  %v684_v10 = vmul.f32 -1.442695, %v1224_v42  ;;  %v101_v12 = vmul.f32 %v739_v62, %v1092_v5 }
  0x23   :  { %v915_v8 = vpop.eup %914  ;;  %934 = vrcp.f32 %v276_v60  ;;  %v262_v9 = vadd.f32 1.0, %v913_v0  ;;  %v685_v16 = vmul.f32 -1.442695, %v1233_v51  ;;  %v700_v17 = vmul.f32 -1.442695, %v1238_v61 }
  0x24   :  { %v917_v13 = vpop.eup %916  ;;  %936 = vrcp.f32 %v261_v1  ;;  %v277_v15 = vadd.f32 1.0, %v915_v8  ;;  %v1252_v20 = vadd.f32 %v1106_v11, %v100_v6  ;;  %v770_v21 = vunpack.c.l.bf16 %v792_v7 }
  0x25   :  { %v919_v18 = vpop.eup %918  ;;  %938 = vrcp.f32 %v262_v9  ;;  %v278_v19 = vadd.f32 1.0, %v917_v13  ;;  %v701_v28 = vmul.f32 -1.442695, %v1241_v4  ;;  %v771_v30 = vunpack.c.h.bf16 %v792_v7  ;;  %v793_v9 = vld [vmem:[%s1369_s0 + $0x70] sm:$0xff]  }
  0x26   :  { %v921_v24 = vpop.eup %920  ;;  %940 = vrcp.f32 %v277_v15  ;;  %v263_v25 = vadd.f32 1.0, %v919_v18  ;;  %v1260_v39 = vadd.f32 %v1106_v11, %v101_v12  ;;  %v116_v40 = vmul.f32 %v770_v21, %v1092_v5 }
  0x27   :  { %v923_v34 = vpop.eup %922  ;;  %v353_v35 = vmul.f32 %v921_v24, %v1120_v26  ;;  %942 = vrcp.f32 %v278_v19  ;;  %v117_v46 = vmul.f32 %v771_v30, %v1092_v5  ;;  %v742_v48 = vunpack.c.l.bf16 %v785_v22 }
  0x28   :  { %v925_v43 = vpop.eup %924  ;;  %v354_v45 = vmul.f32 %v923_v34, %v1123_v27  ;;  %944 = vpow2.f32 %v1218_v36  ;;  %v686_v26 = vmul.f32 -1.442695, %v1252_v20  ;;  %v743_v52 = vunpack.c.h.bf16 %v785_v22 }
  0x29   :  { %v927_v49 = vpop.eup %926  ;;  %v369_v50 = vmul.f32 %v925_v43, %v1131_v31  ;;  %946 = vrcp.f32 %v263_v25  ;;  %v1271_v27 = vadd.f32 %v1106_v11, %v116_v40  ;;  %v1276_v31 = vadd.f32 %v1106_v11, %v117_v46  ;;  %v794_v40 = vld [vmem:[%s1369_s0 + $0x78] sm:$0xff]  }
  0x2a   :  { %v929_v53 = vpop.eup %928  ;;  %v385_v54 = vpack.c.bf16 %v354_v45, %v353_v35  ;;  %v370_v56 = vmul.f32 %v927_v49, %v1134_v32  ;;  %948 = vpow2.f32 %v1221_v41  ;;  %v102_v59 = vmul.f32 %v742_v48, %v1092_v5 }
  0x2b   :  { %v931_v36 = vpop.eup %930  ;;  %v355_v57 = vmul.f32 %v929_v53, %v1137_v33  ;;  %950 = vpow2.f32 %v1230_v47  ;;  %v687_v41 = vmul.f32 -1.442695, %v1260_v39  ;;  %v103_v33 = vmul.f32 %v743_v52, %v1092_v5 }
  0x2c   :  { %v933_v60 = vpop.eup %932  ;;  %835 = vmatprep.mubr.bf16.mxu0 %v385_v54  ;;  %v393_v62 = vpack.c.bf16 %v370_v56, %v369_v50  ;;  %v356_v32 = vmul.f32 %v931_v36, %v1143_v37  ;;  %952 = vpow2.f32 %v684_v10  ;;  %v1284_v47 = vadd.f32 %v1106_v11, %v102_v59 }
  0x2d   :  { %v935_v0 = vpop.eup %934  ;;  %v371_v1 = vmul.f32 %v933_v60, %v1146_v38  ;;  %954 = vpow2.f32 %v685_v16  ;;  %v702_v37 = vmul.f32 -1.442695, %v1271_v27  ;;  %v703_v12 = vmul.f32 -1.442695, %v1276_v31 }
  0x2e   :  { %v937_v6 = vpop.eup %936  ;;  %851 = vmatprep.mubr.bf16.mxu1 %v393_v62  ;;  %v386_v7 = vpack.c.bf16 %v356_v32, %v355_v57  ;;  %v372_v8 = vmul.f32 %v935_v0, %v1158_v44  ;;  %956 = vpow2.f32 %v700_v17  ;;  %v1294_v13 = vadd.f32 %v1106_v11, %v103_v33 }
  0x2f   :  { %v939_v10 = vpop.eup %938  ;;  %v357_v38 = vmul.f32 %v937_v6, %v1169_v55  ;;  %958 = vpow2.f32 %v701_v28  ;;  %v688_v17 = vmul.f32 -1.442695, %v1284_v47  ;;  %v774_v21 = vunpack.c.l.bf16 %v793_v9 }
  0x30   :  { %v941_v15 = vpop.eup %940  ;;  %836 = vmatmul.mubr.bf16.vlgmr.msra.gmra.mrb[0].mxu0 %v386_v7  ;;  %v394_v16 = vpack.c.bf16 %v372_v8, %v371_v1  ;;  %v358_v44 = vmul.f32 %v939_v10, %v1173_v58  ;;  %960 = vpow2.f32 %v686_v26  ;;  %v689_v25 = vmul.f32 -1.442695, %v1294_v13  ;;  %v786_v58 = vld [vmem:[%s1369_s0 + $0x38] sm:$0xff]   ;;  %s1046_s0 = smov [#allocation2]  }
  0x31   :  { %v943_v18 = vpop.eup %942  ;;  %v373_v19 = vmul.f32 %v941_v15, %v1182_v63  ;;  %962 = vpow2.f32 %v687_v41  ;;  %v775_v35 = vunpack.c.h.bf16 %v793_v9  ;;  %v746_v45 = vunpack.c.l.bf16 %v786_v58  ;;  %s663_s10 = sshll.u32 %s1046_s0, 4  ;;  %s664_s10 = int_to_ptr.vmem [resolvable:$true] %s663_s10 }
  0x32   :  { %v945_v55 = vpop.eup %944  ;;  %852 = vmatmul.mubr.bf16.vlgmr.msra.gmra.mrb[0].mxu1 %v394_v16  ;;  %v387_v22 = vpack.c.bf16 %v358_v44, %v357_v38  ;;  %v374_v24 = vmul.f32 %v943_v18, %v1187_v2  ;;  %964 = vpow2.f32 %v702_v37  ;;  %v118_v49 = vmul.f32 %v774_v21, %v1092_v5  ;;  %s1022_s11 = scalar_lea.vmem %s664_s10, 4096  ;;  %p1027_p1 = scmp.lt.s32.totalorder %s664_s10, %s664_s10 }
  0x33   :  { %v947_v28 = vpop.eup %946  ;;  %v264_v30 = vadd.f32 1.0, %v945_v55  ;;  %966 = vpow2.f32 %v703_v12  ;;  %v747_v50 = vunpack.c.h.bf16 %v786_v58  ;;  %v778_v53 = vunpack.c.l.bf16 %v794_v40  ;;  %p1023_p0 = scmp.ne.s32.totalorder %s664_s10, %s1022_s11  ;;  %p1028_p2 = scmp.lt.s32.totalorder %s1022_s11, %s1022_s11 }
  0x34   :  { %v949_v34 = vpop.eup %948  ;;  %839 = vmatprep.mubr.bf16.mxu0 %v387_v22  ;;  %v395_v63 = vpack.c.bf16 %v374_v24, %v373_v19  ;;  %968 = vpow2.f32 %v688_v17  ;;  %v119_v36 = vmul.f32 %v775_v35, %v1092_v5  ;;  %v779_v57 = vunpack.c.h.bf16 %v794_v40 }
  0x35   :  { %v951_v2 = vpop.eup %950  ;;  %970 = vrcp.f32 %v264_v30  ;;  %v279_v43 = vadd.f32 1.0, %v949_v34  ;;  %v104_v62 = vmul.f32 %v746_v45, %v1092_v5  ;;  %v1311_v0 = vadd.f32 %v1106_v11, %v118_v49  ;;  %p1029_p3 = por %p1028_p2, %p1027_p1 }
  0x36   :  { %v953_v46 = vpop.eup %952  ;;  %855 = vmatprep.mubr.bf16.mxu1 %v395_v63  ;;  %v280_v48 = vadd.f32 1.0, %v951_v2  ;;  %972 = vpow2.f32 %v689_v25  ;;  %v105_v1 = vmul.f32 %v747_v50, %v1092_v5  ;;  %v120_v7 = vmul.f32 %v778_v53, %v1092_v5 }
  0x37   :  { %v955_v26 = vpop.eup %954  ;;  %974 = vrcp.f32 %v279_v43  ;;  %v265_v52 = vadd.f32 1.0, %v953_v46  ;;  %v1316_v9 = vadd.f32 %v1106_v11, %v119_v36  ;;  %v121_v10 = vmul.f32 %v779_v57, %v1092_v5  ;;  %p1030_p4 = pnand %p1029_p3, %p1023_p0 }
  0x38   :  { %v957_v54 = vpop.eup %956  ;;  %976 = vrcp.f32 %v280_v48  ;;  %v266_v56 = vadd.f32 1.0, %v955_v26  ;;  %v359_v12 = vmul.f32 %v947_v28, %v1190_v3  ;;  %v1321_v16 = vadd.f32 %v1106_v11, %v104_v62 }
  0x39   :  { %v959_v59 = vpop.eup %958  ;;  %978 = vrcp.f32 %v265_v52  ;;  %v281_v60 = vadd.f32 1.0, %v957_v54  ;;  %v704_v18 = vmul.f32 -1.442695, %v1311_v0  ;;  %v1325_v19 = vadd.f32 %v1106_v11, %v105_v1 }
  0x3a   :  { %v961_v32 = vpop.eup %960  ;;  %980 = vrcp.f32 %v266_v56  ;;  %v282_v41 = vadd.f32 1.0, %v959_v59  ;;  %v1328_v5 = vadd.f32 %v1106_v11, %v120_v7  ;;  %v705_v24 = vmul.f32 -1.442695, %v1316_v9 }
  0x3b   :  { %v963_v33 = vpop.eup %962  ;;  %982 = vrcp.f32 %v281_v60  ;;  %v267_v6 = vadd.f32 1.0, %v961_v32  ;;  %v1333_v25 = vadd.f32 %v1106_v11, %v121_v10  ;;  %v690_v30 = vmul.f32 -1.442695, %v1321_v16 }
  0x3c   :  { %v965_v8 = vpop.eup %964  ;;  %984 = vrcp.f32 %v282_v41  ;;  %v268_v37 = vadd.f32 1.0, %v963_v33  ;;  %v691_v40 = vmul.f32 -1.442695, %v1325_v19  ;;  %v706_v43 = vmul.f32 -1.442695, %v1328_v5 }
  0x3d   :  { %v967_v38 = vpop.eup %966  ;;  %986 = vrcp.f32 %v267_v6  ;;  %v283_v15 = vadd.f32 1.0, %v965_v8  ;;  %v707_v46 = vmul.f32 -1.442695, %v1333_v25 }
  0x3e   :  { %v969_v44 = vpop.eup %968  ;;  %988 = vrcp.f32 %v268_v37  ;;  %v284_v17 = vadd.f32 1.0, %v967_v38 }
  0x3f   :  { %v971_v21 = vpop.eup %970  ;;  %990 = vrcp.f32 %v283_v15  ;;  %v269_v55 = vadd.f32 1.0, %v969_v44 }
  0x40   :  { %v973_v3 = vpop.eup %972  ;;  %v360_v22 = vmul.f32 %v971_v21, %v1205_v14  ;;  %992 = vrcp.f32 %v284_v17 }
  0x41   :  { %v975_v58 = vpop.eup %974  ;;  %v270_v28 = vadd.f32 1.0, %v973_v3  ;;  %994 = vrcp.f32 %v269_v55 }
  0x42   :  { %v977_v34 = vpop.eup %976  ;;  %v388_v63 = vpack.c.bf16 %v360_v22, %v359_v12  ;;  %v375_v35 = vmul.f32 %v975_v58, %v1210_v23  ;;  %996 = vpow2.f32 %v704_v18 }
  0x43   :  { %v979_v2 = vpop.eup %978  ;;  %v376_v14 = vmul.f32 %v977_v34, %v1214_v29  ;;  %998 = vrcp.f32 %v270_v28 }
  0x44   :  { %v981_v11 = vpop.eup %980  ;;  %840 = vmatmul.mubr.bf16.gmra.mrb[4].mxu0 %v388_v63  ;;  %v361_v45 = vmul.f32 %v979_v2, %v1224_v42  ;;  %1000 = vpow2.f32 %v705_v24 }
  0x45   :  { %v983_v48 = vpop.eup %982  ;;  %v396_v49 = vpack.c.bf16 %v376_v14, %v375_v35  ;;  %v362_v23 = vmul.f32 %v981_v11, %v1233_v51  ;;  %1002 = vpow2.f32 %v690_v30 }
  0x46   :  { %v985_v50 = vpop.eup %984  ;;  %v377_v26 = vmul.f32 %v983_v48, %v1238_v61  ;;  %1004 = vpow2.f32 %v691_v40 }
  0x47   :  { %v987_v29 = vpop.eup %986  ;;  %856 = vmatmul.mubr.bf16.gmra.mrb[4].mxu1 %v396_v49  ;;  %v389_v52 = vpack.c.bf16 %v362_v23, %v361_v45  ;;  %v378_v53 = vmul.f32 %v985_v50, %v1241_v4  ;;  %1006 = vpow2.f32 %v706_v43 }
  0x48   :  { %v989_v54 = vpop.eup %988  ;;  %v363_v42 = vmul.f32 %v987_v29, %v1252_v20  ;;  %1008 = vpow2.f32 %v707_v46 }
  0x49   :  { %v991_v56 = vpop.eup %990  ;;  %843 = vmatprep.mubr.bf16.mxu0 %v389_v52  ;;  %v397_v36 = vpack.c.bf16 %v378_v53, %v377_v26  ;;  %v364_v51 = vmul.f32 %v989_v54, %v1260_v39 }
  0x4a   :  { %v993_v57 = vpop.eup %992  ;;  %v379_v59 = vmul.f32 %v991_v56, %v1271_v27 }
  0x4b   :  { %v995_v61 = vpop.eup %994  ;;  %859 = vmatprep.mubr.bf16.mxu1 %v397_v36  ;;  %v390_v60 = vpack.c.bf16 %v364_v51, %v363_v42  ;;  %v380_v62 = vmul.f32 %v993_v57, %v1276_v31 }
  0x4c   :  { %v997_v32 = vpop.eup %996  ;;  %v365_v4 = vmul.f32 %v995_v61, %v1284_v47 }
  0x4d   :  { %v999_v41 = vpop.eup %998  ;;  %844 = vmatmul.mubr.bf16.gmra.mrb[8].mxu0 %v390_v60  ;;  %v398_v20 = vpack.c.bf16 %v380_v62, %v379_v59  ;;  %v285_v1 = vadd.f32 1.0, %v997_v32 }
  0x4e   :  { %v1001_v33 = vpop.eup %1000  ;;  %v366_v6 = vmul.f32 %v999_v41, %v1294_v13 }
  0x4f   :  { %v1003_v7 = vpop.eup %1002  ;;  %860 = vmatmul.mubr.bf16.gmra.mrb[8].mxu1 %v398_v20  ;;  %v286_v39 = vadd.f32 1.0, %v1001_v33  ;;  %1010 = vrcp.f32 %v285_v1 }
  0x50   :  { %v1005_v27 = vpop.eup %1004  ;;  %v391_v8 = vpack.c.bf16 %v366_v6, %v365_v4  ;;  %v271_v37 = vadd.f32 1.0, %v1003_v7 }
  0x51   :  { %v1007_v10 = vpop.eup %1006  ;;  %1012 = vrcp.f32 %v286_v39  ;;  %v272_v31 = vadd.f32 1.0, %v1005_v27 }
  0x52   :  { %v1009_v38 = vpop.eup %1008  ;;  %847 = vmatprep.mubr.bf16.mxu0 %v391_v8  ;;  %1014 = vrcp.f32 %v271_v37  ;;  %v287_v47 = vadd.f32 1.0, %v1007_v10 }
  0x53   :  { %1016 = vrcp.f32 %v272_v31  ;;  %v288_v12 = vadd.f32 1.0, %v1009_v38 }
  0x54   :  { %1018 = vrcp.f32 %v287_v47 }
  0x55   :  { %1020 = vrcp.f32 %v288_v12 }
  0x59   :  { %v1011_v15 = vpop.eup %1010 }
  0x5a   :  { %v381_v13 = vmul.f32 %v1011_v15, %v1311_v0 }
  0x5b   :  { %v1013_v44 = vpop.eup %1012 }
  0x5c   :  { %v1015_v17 = vpop.eup %1014  ;;  %v382_v18 = vmul.f32 %v1013_v44, %v1316_v9 }
  0x5d   :  { %v1017_v21 = vpop.eup %1016  ;;  %v367_v55 = vmul.f32 %v1015_v17, %v1321_v16 }
  0x5e   :  { %v1019_v3 = vpop.eup %1018  ;;  %v399_v22 = vpack.c.bf16 %v382_v18, %v381_v13  ;;  %v368_v24 = vmul.f32 %v1017_v21, %v1325_v19 }
  0x5f   :  { %v1021_v58 = vpop.eup %1020  ;;  %v383_v28 = vmul.f32 %v1019_v3, %v1328_v5 }
  0x60   :  { %863 = vmatprep.mubr.bf16.mxu1 %v399_v22  ;;  %v392_v30 = vpack.c.bf16 %v368_v24, %v367_v55  ;;  %v384_v34 = vmul.f32 %v1021_v58, %v1333_v25 }
  0x62   :  { %848 = vmatmul.mubr.bf16.gmra.mrb[12].mxu0 %v392_v30  ;;  %v400_v0 = vpack.c.bf16 %v384_v34, %v383_v28 }
  0x64   :  { %864 = vmatmul.mubr.bf16.gmra.mrb[12].mxu1 %v400_v0 }
 0x103   :  { %v837_v63 = vpop.f32.mrb[0].mxu0 }
 0x104   :  { %628 = vst [vmem:[#allocation2 + $0x10] sm:$0xff] %v837_v63  ;;  %v499_v9 = vpop.f32.mrb[1].mxu0 }
 0x105   :  { %v853_v35 = vpop.f32.mrb[0].mxu1  ;;  %626 = vst [vmem:[#allocation2] sm:$0xff] %v499_v9  ;;  %v838_v16 = vpop.f32.mrb[2].mxu0 }
 0x106   :  { %644 = vst [vmem:[#allocation2 + $0x90] sm:$0xff] %v853_v35  ;;  %v563_v40 = vpop.f32.mrb[1].mxu1  ;;  %629 = vst [vmem:[#allocation2 + $0x18] sm:$0xff] %v838_v16  ;;  %v502_v19 = vpop.f32.mrb[3].mxu0 }
 0x107   :  { %642 = vst [vmem:[#allocation2 + $0x80] sm:$0xff] %v563_v40  ;;  %v854_v2 = vpop.f32.mrb[2].mxu1  ;;  %627 = vst [vmem:[#allocation2 + $0x8] sm:$0xff] %v502_v19 }
 0x108   :  { %645 = vst [vmem:[#allocation2 + $0x98] sm:$0xff] %v854_v2  ;;  %v566_v5 = vpop.f32.mrb[3].mxu1 }
 0x109   :  { %643 = vst [vmem:[#allocation2 + $0x88] sm:$0xff] %v566_v5 }
 0x117   :  { %v841_v25 = vpop.f32.mrb[4].mxu0 }
 0x118   :  { %632 = vst [vmem:[#allocation2 + $0x30] sm:$0xff] %v841_v25  ;;  %v515_v14 = vpop.f32.mrb[5].mxu0 }
 0x119   :  { %630 = vst [vmem:[#allocation2 + $0x20] sm:$0xff] %v515_v14  ;;  %v842_v43 = vpop.f32.mrb[6].mxu0 }
 0x11a   :  { %v857_v11 = vpop.f32.mrb[4].mxu1  ;;  %633 = vst [vmem:[#allocation2 + $0x38] sm:$0xff] %v842_v43  ;;  %v518_v45 = vpop.f32.mrb[7].mxu0 }
 0x11b   :  { %648 = vst [vmem:[#allocation2 + $0xb0] sm:$0xff] %v857_v11  ;;  %v579_v46 = vpop.f32.mrb[5].mxu1  ;;  %631 = vst [vmem:[#allocation2 + $0x28] sm:$0xff] %v518_v45 }
 0x11c   :  { %646 = vst [vmem:[#allocation2 + $0xa0] sm:$0xff] %v579_v46  ;;  %v858_v48 = vpop.f32.mrb[6].mxu1 }
 0x11d   :  { %649 = vst [vmem:[#allocation2 + $0xb8] sm:$0xff] %v858_v48  ;;  %v582_v49 = vpop.f32.mrb[7].mxu1 }
 0x11e   :  { %647 = vst [vmem:[#allocation2 + $0xa8] sm:$0xff] %v582_v49 }
 0x120   :  { %v845_v23 = vpop.f32.mrb[8].mxu0 }
 0x121   :  { %636 = vst [vmem:[#allocation2 + $0x50] sm:$0xff] %v845_v23  ;;  %v531_v50 = vpop.f32.mrb[9].mxu0 }
 0x122   :  { %v861_v26 = vpop.f32.mrb[8].mxu1  ;;  %634 = vst [vmem:[#allocation2 + $0x40] sm:$0xff] %v531_v50  ;;  %v846_v29 = vpop.f32.mrb[10].mxu0 }
 0x123   :  { %652 = vst [vmem:[#allocation2 + $0xd0] sm:$0xff] %v861_v26  ;;  %v595_v52 = vpop.f32.mrb[9].mxu1  ;;  %637 = vst [vmem:[#allocation2 + $0x58] sm:$0xff] %v846_v29  ;;  %v534_v53 = vpop.f32.mrb[11].mxu0 }
 0x124   :  { %650 = vst [vmem:[#allocation2 + $0xc0] sm:$0xff] %v595_v52  ;;  %v862_v54 = vpop.f32.mrb[10].mxu1  ;;  %635 = vst [vmem:[#allocation2 + $0x48] sm:$0xff] %v534_v53 }
 0x125   :  { %653 = vst [vmem:[#allocation2 + $0xd8] sm:$0xff] %v862_v54  ;;  %v598_v42 = vpop.f32.mrb[11].mxu1 }
 0x126   :  { %651 = vst [vmem:[#allocation2 + $0xc8] sm:$0xff] %v598_v42 }
 0x135   :  { %v849_v56 = vpop.f32.mrb[12].mxu0 }
 0x136   :  { %640 = vst [vmem:[#allocation2 + $0x70] sm:$0xff] %v849_v56  ;;  %v547_v36 = vpop.f32.mrb[13].mxu0 }
 0x137   :  { %v865_v51 = vpop.f32.mrb[12].mxu1  ;;  %638 = vst [vmem:[#allocation2 + $0x60] sm:$0xff] %v547_v36  ;;  %v850_v57 = vpop.f32.mrb[14].mxu0 }
 0x138   :  { %656 = vst [vmem:[#allocation2 + $0xf0] sm:$0xff] %v865_v51  ;;  %v611_v59 = vpop.f32.mrb[13].mxu1  ;;  %641 = vst [vmem:[#allocation2 + $0x78] sm:$0xff] %v850_v57  ;;  %v550_v61 = vpop.f32.mrb[15].mxu0 }
 0x139   :  { %654 = vst [vmem:[#allocation2 + $0xe0] sm:$0xff] %v611_v59  ;;  %v866_v60 = vpop.f32.mrb[14].mxu1  ;;  %639 = vst [vmem:[#allocation2 + $0x68] sm:$0xff] %v550_v61 }
 0x13a   :  { %657 = vst [vmem:[#allocation2 + $0xf8] sm:$0xff] %v866_v60  ;;  %v614_v62 = vpop.f32.mrb[15].mxu1 }
 0x13b   :  { %655 = vst [vmem:[#allocation2 + $0xe8] sm:$0xff] %v614_v62 }
 0x13c   :  { %1033 = shalt.err (!%p1030_p4)
}
 0x13d   :  { %s1034_s14 = scalar_lea.hbm %s1373_s4, 4096 }
 0x13e   :  { %p1035_p5 = scmp.ne.s32.totalorder %s1373_s4, %s1034_s14  ;;  %p1038_p6 = scmp.lt.u32.totalorder %s1034_s14, %s1373_s4 }
 0x140   :  { %p1040_p7 = pnand %p1038_p6, %p1035_p5 }
 0x142   :  { %1043 = shalt.err (!%p1040_p7)
}
 0x143   :  { %s1047_s19 = smov 128   ;;  %s1048_s20 = smov 8  }
 0x144   :  { %669 = dma.vmem_to_hbm [thread:$0]  %s664_s10, 4096, %s1373_s4, [#allocation3], %s1047_s19, %s1047_s19, %s1048_s20  }
 0x145   :  { %1044 = dma.done.wait [#allocation3], 4096  }
 0x146   :  { %1045 = vsyncadd [#allocation3], 4294963200 }
 0x147   :  { %673 = vsyncpa [#allocation3], 1 }

// kernel: _forward_impl.2
= control target key start
LH: loop header
LB: loop body
LE: loop exit
PB: predicated region body
PF: predicated region fallthrough
CT: control target
= control target key end

     0   :  { %s2116_s26 = smov 0   ;;  %s2118_s2 = smov 0   ;;  %s2705_s0 = inlined_call_operand.vmem [shape: f32[2,128,128], index: 0, kind: input, shape index: {}, may-alias: {0,1,2}]   ;;  %s2706_s1 = inlined_call_operand.vmem [shape: f32[2,128,128], index: 1, kind: input, shape index: {}, may-alias: {0,1,2}]   ;;  %s2707_s2 = inlined_call_operand.vmem [shape: f32[2,128,128], index: 2, kind: input, shape index: {}, may-alias: {0,1,2}]   ;;  %s2708_s3 = inlined_call_operand.vmem [shape: bf16[128,256], index: 3, kind: input, shape index: {}]   ;;  %s2709_s4 = inlined_call_operand.vmem [shape: f32[1,256], index: 4, kind: input, shape index: {}]   ;;  %s2710_s5 = inlined_call_operand.vmem [shape: f32[7,128], index: 5, kind: input, shape index: {}]   ;;  %s2711_s6 = inlined_call_operand.vmem [shape: bf16[2,128,128], index: 6, kind: output, shape index: {0}]   ;;  %s2712_s7 = inlined_call_operand.vmem [shape: f32[2,1,128], index: 7, kind: output, shape index: {1}]   ;;  %s2713_s8 = inlined_call_operand.vmem [shape: f32[2,1,128], index: 8, kind: output, shape index: {2}]  }
   0x1   :  { %s2120_s27 = smov 0  }
   0x2 LB: > { %s31_s28 = sadd.s32 1, %s2063_s2  ;;  %p1763_p0 = scmp.ge.s32.totalorder %s2067_s27, 1  ;;  %s2067_s27 = sphi %s2120_s27, %s19_s27   ;;  %s2063_s2 = sphi %s2118_s2, %s2715_s2   ;;  %s2059_s26 = sphi %s2116_s26, %s2714_s26  }
   0x3   : > { %p33_p1 = scmp.ge.s32.totalorder %s31_s28, 2  ;;  %p354_p2 = scmp.lt.s32.totalorder %s2067_s27, 3 }
   0x5   : > { %s2717_s28 = smov (%p33_p1, %s31_s28), 0  ;;  %p355_p3 = pnand %p1763_p0, %p354_p2 }
   0x6   : > { %p445_p4 = scmp.lt.s32.totalorder (!%p355_p3), %s2059_s26, 1  ;;  %v1925_v0 = vld [vmem:[%s2708_s3 + $0x4] ss:$8 sps:$4 sm:$0xff] (!%p355_p3)   ;;  %v1927_v9 = vld [vmem:[%s2708_s3] ss:$8 sps:$4 sm:$0xff] (!%p355_p3)   ;;  %v2069_v42 = vmov (!%p355_p3), 0  }
   0x7   : > { %358 = sbr.rel (%p355_p3) target bundleno = 561 (0x231), region = 44  ;;  %849 = vmatprep.subr.bf16.mxu0 (!%p355_p3), %v1925_v0  ;;  %1883 = vmatprep.subr.bf16.mxu1 (!%p355_p3), %v1925_v0  ;;  %v1928_v12 = vld [vmem:[%s2708_s3 + $0x14] ss:$8 sps:$4 sm:$0xff] (!%p355_p3)   ;;  %v1930_v13 = vld [vmem:[%s2708_s3 + $0x10] ss:$8 sps:$4 sm:$0xff] (!%p355_p3)  }
   0x8   : > { %850 = vmatpush1.bf16.msra.mxu0 (!%p355_p3), %v1927_v9  ;;  %1891 = vmatpush1.bf16.msra.mxu1 (!%p355_p3), %v1927_v9  ;;  %v1931_v16 = vld [vmem:[%s2708_s3 + $0x24] ss:$8 sps:$4 sm:$0xff] (!%p355_p3)   ;;  %v1933_v19 = vld [vmem:[%s2708_s3 + $0x20] ss:$8 sps:$4 sm:$0xff] (!%p355_p3)   ;;  %v1934_v20 = vld [vmem:[%s2708_s3 + $0x34] ss:$8 sps:$4 sm:$0xff] (!%p355_p3)  }
   0x9   : > { %851 = vmatprep.subr.bf16.mxu0 (!%p355_p3), %v1928_v12  ;;  %1884 = vmatprep.subr.bf16.mxu1 (!%p355_p3), %v1928_v12  ;;  %v1936_v23 = vld [vmem:[%s2708_s3 + $0x30] ss:$8 sps:$4 sm:$0xff] (!%p355_p3)   ;;  %v1937_v24 = vld [vmem:[%s2708_s3 + $0x44] ss:$8 sps:$4 sm:$0xff] (!%p355_p3)   ;;  %v1939_v27 = vld [vmem:[%s2708_s3 + $0x40] ss:$8 sps:$4 sm:$0xff] (!%p355_p3)  }
   0xa   : > { %v1940_v28 = vld [vmem:[%s2708_s3 + $0x54] ss:$8 sps:$4 sm:$0xff] (!%p355_p3)   ;;  %v1942_v31 = vld [vmem:[%s2708_s3 + $0x50] ss:$8 sps:$4 sm:$0xff] (!%p355_p3)   ;;  %v1943_v34 = vld [vmem:[%s2708_s3 + $0x64] ss:$8 sps:$4 sm:$0xff] (!%p355_p3)   ;;  %881 = vmatprep.mubr.bf16.mxu0 (!%p355_p3), %v2069_v42  ;;  %921 = vmatprep.mubr.bf16.mxu1 (!%p355_p3), %v2069_v42 }
   0xb   : > { %v1945_v35 = vld [vmem:[%s2708_s3 + $0x60] ss:$8 sps:$4 sm:$0xff] (!%p355_p3)   ;;  %v1946_v38 = vld [vmem:[%s2708_s3 + $0x74] ss:$8 sps:$4 sm:$0xff] (!%p355_p3)   ;;  %v1948_v39 = vld [vmem:[%s2708_s3 + $0x70] ss:$8 sps:$4 sm:$0xff] (!%p355_p3)  }
   0xc   : > { %852 = vmatpush1.bf16.msra.mxu0 (!%p355_p3), %v1930_v13  ;;  %1892 = vmatpush1.bf16.msra.mxu1 (!%p355_p3), %v1930_v13 }
   0xd   : > { %853 = vmatprep.subr.bf16.mxu0 (!%p355_p3), %v1931_v16  ;;  %1885 = vmatprep.subr.bf16.mxu1 (!%p355_p3), %v1931_v16 }
   0xe   : > { %s2719_s26 = smov (!%p445_p4, %s2059_s26), 1 }
   0xf   : > { %s1818_s9 = sshll.u32 %s2719_s26, 7  ;;  %s1819_s29 = sshll.u32 %s2719_s26, 6 }
  0x10   : > { %s2143_s12 = scalar_lea.vmem %s2706_s1, %s1818_s9  ;;  %854 = vmatpush1.bf16.msra.mxu0 %v1933_v19  ;;  %1893 = vmatpush1.bf16.msra.mxu1 %v1933_v19  ;;  %s2512_s10 = scalar_lea.vmem %s2711_s6, %s1819_s29 }
  0x11   : > { %v2146_v1 = vld [vmem:[%s2143_s12 + $0x18] sm:$0xff]  ;;  %v2149_v2 = vld [vmem:[%s2143_s12] sm:$0xff]  ;;  %v2156_v4 = vld [vmem:[%s2143_s12 + $0x8] sm:$0xff]  ;;  %855 = vmatprep.subr.bf16.mxu0 %v1934_v20  ;;  %1886 = vmatprep.subr.bf16.mxu1 %v1934_v20  ;;  %s483_s14 = scalar_lea.vmem %s2712_s7, %s2719_s26  ;;  %s488_s17 = scalar_lea.vmem %s2713_s8, %s2719_s26 }
  0x12   : > { %531 = vadd.xlane.f32.xlu1 %v2146_v1  ;;  %525 = vadd.xlane.f32.xlu0 %v2149_v2  ;;  %v557_v3 = vmul.f32 %v2149_v2, %v2149_v2  ;;  %v558_v5 = vmul.f32 %v2156_v4, %v2156_v4  ;;  %v2162_v6 = vld [vmem:[%s2143_s12 + $0x10] sm:$0xff]  ;;  %v560_v8 = vmul.f32 %v2146_v1, %v2146_v1  ;;  %v2173_v10 = vld [vmem:[%s2143_s12 + $0x20] sm:$0xff]  ;;  %v2176_v11 = vld [vmem:[%s2143_s12 + $0x28] sm:$0xff] }
  0x13   : > { %v559_v7 = vmul.f32 %v2162_v6, %v2162_v6  ;;  %v2187_v14 = vld [vmem:[%s2143_s12 + $0x40] sm:$0xff]  ;;  %v2190_v15 = vld [vmem:[%s2143_s12 + $0x48] sm:$0xff]  ;;  %v561_v17 = vmul.f32 %v2173_v10, %v2173_v10  ;;  %v562_v18 = vmul.f32 %v2176_v11, %v2176_v11  ;;  %v2218_v25 = vld [vmem:[%s2143_s12 + $0x30] sm:$0xff] }
  0x14   : > { %v565_v21 = vmul.f32 %v2187_v14, %v2187_v14  ;;  %v566_v22 = vmul.f32 %v2190_v15, %v2190_v15  ;;  %856 = vmatpush1.bf16.msra.mxu0 %v1936_v23  ;;  %1894 = vmatpush1.bf16.msra.mxu1 %v1936_v23  ;;  %v2221_v26 = vld [vmem:[%s2143_s12 + $0x38] sm:$0xff]  ;;  %v2232_v29 = vld [vmem:[%s2143_s12 + $0x50] sm:$0xff]  ;;  %v563_v32 = vmul.f32 %v2218_v25, %v2218_v25  ;;  %v2263_v40 = vld [vmem:[%s2143_s12 + $0x60] sm:$0xff] }
  0x15   : > { %857 = vmatprep.subr.bf16.mxu0 %v1937_v24  ;;  %1887 = vmatprep.subr.bf16.mxu1 %v1937_v24  ;;  %v2235_v30 = vld [vmem:[%s2143_s12 + $0x58] sm:$0xff]  ;;  %v564_v33 = vmul.f32 %v2221_v26, %v2221_v26  ;;  %v567_v36 = vmul.f32 %v2232_v29, %v2232_v29  ;;  %v2266_v41 = vld [vmem:[%s2143_s12 + $0x68] sm:$0xff]  ;;  %v569_v43 = vmul.f32 %v2263_v40, %v2263_v40  ;;  %v2277_v45 = vld [vmem:[%s2143_s12 + $0x70] sm:$0xff] }
  0x16   : > { %527 = vadd.xlane.f32.xlu0 %v2156_v4  ;;  %573 = vadd.xlane.f32.xlu1 %v557_v3  ;;  %v568_v37 = vmul.f32 %v2235_v30, %v2235_v30  ;;  %v570_v44 = vmul.f32 %v2266_v41, %v2266_v41  ;;  %v2280_v46 = vld [vmem:[%s2143_s12 + $0x78] sm:$0xff]  ;;  %v571_v47 = vmul.f32 %v2277_v45, %v2277_v45 }
  0x17   : > { %v572_v48 = vmul.f32 %v2280_v46, %v2280_v46 }
  0x18   : > { %858 = vmatpush1.bf16.msra.mxu0 %v1939_v27  ;;  %1895 = vmatpush1.bf16.msra.mxu1 %v1939_v27 }
  0x19   : > { %859 = vmatprep.subr.bf16.mxu0 %v1940_v28  ;;  %1888 = vmatprep.subr.bf16.mxu1 %v1940_v28 }
  0x1a   : > { %529 = vadd.xlane.f32.xlu0 %v2162_v6  ;;  %575 = vadd.xlane.f32.xlu1 %v558_v5 }
  0x1c   : > { %860 = vmatpush1.bf16.msra.mxu0 %v1942_v31  ;;  %1896 = vmatpush1.bf16.msra.mxu1 %v1942_v31 }
  0x1d   : > { %861 = vmatprep.subr.bf16.mxu0 %v1943_v34  ;;  %1889 = vmatprep.subr.bf16.mxu1 %v1943_v34 }
  0x1e   : > { %577 = vadd.xlane.f32.xlu0 %v559_v7  ;;  %579 = vadd.xlane.f32.xlu1 %v560_v8 }
  0x20   : > { %862 = vmatpush1.bf16.msra.mxu0 %v1945_v35  ;;  %1897 = vmatpush1.bf16.msra.mxu1 %v1945_v35 }
  0x21   : > { %863 = vmatprep.subr.bf16.mxu0 %v1946_v38  ;;  %1890 = vmatprep.subr.bf16.mxu1 %v1946_v38 }
  0x22   : > { %533 = vadd.xlane.f32.xlu0 %v2173_v10  ;;  %535 = vadd.xlane.f32.xlu1 %v2176_v11 }
  0x24   : > { %864 = vmatpush1.bf16.msra.mxu0 %v1948_v39  ;;  %1898 = vmatpush1.bf16.msra.mxu1 %v1948_v39 }
  0x26   : > { %541 = vadd.xlane.f32.xlu0 %v2187_v14  ;;  %543 = vadd.xlane.f32.xlu1 %v2190_v15 }
  0x2a   : > { %581 = vadd.xlane.f32.xlu0 %v561_v17  ;;  %583 = vadd.xlane.f32.xlu1 %v562_v18 }
  0x2e   : > { %589 = vadd.xlane.f32.xlu0 %v565_v21  ;;  %591 = vadd.xlane.f32.xlu1 %v566_v22 }
  0x32   : > { %537 = vadd.xlane.f32.xlu0 %v2218_v25  ;;  %539 = vadd.xlane.f32.xlu1 %v2221_v26 }
  0x36   : > { %545 = vadd.xlane.f32.xlu0 %v2232_v29  ;;  %547 = vadd.xlane.f32.xlu1 %v2235_v30 }
  0x3a   : > { %585 = vadd.xlane.f32.xlu0 %v563_v32  ;;  %587 = vadd.xlane.f32.xlu1 %v564_v33 }
  0x3e   : > { %593 = vadd.xlane.f32.xlu0 %v567_v36  ;;  %595 = vadd.xlane.f32.xlu1 %v568_v37 }
  0x42   : > { %549 = vadd.xlane.f32.xlu0 %v2263_v40  ;;  %551 = vadd.xlane.f32.xlu1 %v2266_v41 }
  0x46   : > { %597 = vadd.xlane.f32.xlu0 %v569_v43  ;;  %599 = vadd.xlane.f32.xlu1 %v570_v44 }
  0x4a   : > { %553 = vadd.xlane.f32.xlu0 %v2277_v45  ;;  %555 = vadd.xlane.f32.xlu1 %v2280_v46 }
  0x4e   : > { %601 = vadd.xlane.f32.xlu0 %v571_v47  ;;  %603 = vadd.xlane.f32.xlu1 %v572_v48 }
  0x9f   : > { %v532_v49 = vpop.xlane.xlu1 %531  ;;  %v526_v50 = vpop.xlane.xlu0 %525 }
  0xa0   : > { %v606_v51 = vmul.f32 0.0078125, %v526_v50  ;;  %v2288_v58 = vmul.f32 0.0078125, %v532_v49 }
  0xa2   : > { %v638_v54 = vmul.f32 %v606_v51, %v606_v51  ;;  %v641_v7 = vmul.f32 %v2288_v58, %v2288_v58  ;;  %v686_v49 = vsub.f32 %v2149_v2, %v606_v51 }
  0xa3   : > { %v528_v52 = vpop.xlane.xlu0 %527  ;;  %v574_v53 = vpop.xlane.xlu1 %573 }
  0xa4   : > { %v607_v55 = vmul.f32 0.0078125, %v528_v52  ;;  %v622_v56 = vmul.f32 0.0078125, %v574_v53 }
  0xa6   : > { %v654_v57 = vsub.f32 %v622_v56, %v638_v54  ;;  %v639_v61 = vmul.f32 %v607_v55, %v607_v55  ;;  %v687_v50 = vsub.f32 %v2156_v4, %v607_v55 }
  0xa7   : > { %v530_v59 = vpop.xlane.xlu0 %529  ;;  %v576_v60 = vpop.xlane.xlu1 %575 }
  0xa8   : > { %v670_v62 = vmax.f32 %v654_v57, 0.0  ;;  %v2290_v63 = vmul.f32 0.0078125, %v530_v59  ;;  %v623_v0 = vmul.f32 0.0078125, %v576_v60 }
  0xaa   : > { %v702_v3 = vadd.f32 1e-05, %v670_v62  ;;  %v655_v5 = vsub.f32 %v623_v0, %v639_v61  ;;  %v640_v12 = vmul.f32 %v2290_v63, %v2290_v63 }
  0xab   : > { %v578_v8 = vpop.xlane.xlu0 %577  ;;  %v580_v9 = vpop.xlane.xlu1 %579 }
  0xac   : > { %v671_v13 = vmax.f32 %v655_v5, 0.0  ;;  %v624_v16 = vmul.f32 0.0078125, %v578_v8  ;;  %v625_v17 = vmul.f32 0.0078125, %v580_v9  ;;  %1949 = vrsqrt.f32 %v702_v3 }
  0xae   : > { %v703_v18 = vadd.f32 1e-05, %v671_v13  ;;  %v656_v19 = vsub.f32 %v624_v16, %v640_v12  ;;  %v657_v20 = vsub.f32 %v625_v17, %v641_v7  ;;  %v689_v13 = vsub.f32 %v2146_v1, %v2288_v58 }
  0xaf   : > { %v534_v21 = vpop.xlane.xlu0 %533  ;;  %v536_v22 = vpop.xlane.xlu1 %535  ;;  %v688_v16 = vsub.f32 %v2162_v6, %v2290_v63 }
  0xb0   : > { %1951 = vrsqrt.f32 %v703_v18  ;;  %v672_v23 = vmax.f32 %v656_v19, 0.0  ;;  %v673_v24 = vmax.f32 %v657_v20, 0.0  ;;  %v2296_v33 = vmul.f32 0.0078125, %v534_v21 }
  0xb1   : > { %v2298_v34 = vmul.f32 0.0078125, %v536_v22 }
  0xb2   : > { %v704_v27 = vadd.f32 1e-05, %v672_v23  ;;  %v705_v28 = vadd.f32 1e-05, %v673_v24  ;;  %v642_v43 = vmul.f32 %v2296_v33, %v2296_v33 }
  0xb3   : > { %v542_v31 = vpop.xlane.xlu0 %541  ;;  %v544_v32 = vpop.xlane.xlu1 %543  ;;  %v643_v44 = vmul.f32 %v2298_v34, %v2298_v34 }
  0xb4   : > { %1953 = vrsqrt.f32 %v704_v27  ;;  %v2300_v35 = vmul.f32 0.0078125, %v542_v31  ;;  %v2302_v36 = vmul.f32 0.0078125, %v544_v32 }
  0xb5   : > { %1955 = vrsqrt.f32 %v705_v28 }
  0xb6   : > { %v1950_v39 = vpop.eup %1949  ;;  %v646_v56 = vmul.f32 %v2300_v35, %v2300_v35  ;;  %v647_v57 = vmul.f32 %v2302_v36, %v2302_v36 }
  0xb7   : > { %v582_v37 = vpop.xlane.xlu0 %581  ;;  %v584_v38 = vpop.xlane.xlu1 %583  ;;  %v734_v61 = vmul.f32 %v1950_v39, %v686_v49 }
  0xb8   : > { %v626_v47 = vmul.f32 0.0078125, %v582_v37  ;;  %v627_v48 = vmul.f32 0.0078125, %v584_v38 }
  0xba   : > { %v1952_v52 = vpop.eup %1951  ;;  %v658_v53 = vsub.f32 %v626_v47, %v642_v43  ;;  %v659_v54 = vsub.f32 %v627_v48, %v643_v44  ;;  %v690_v47 = vsub.f32 %v2173_v10, %v2296_v33  ;;  %v694_v33 = vsub.f32 %v2187_v14, %v2300_v35 }
  0xbb   : > { %v590_v59 = vpop.xlane.xlu0 %589  ;;  %v592_v60 = vpop.xlane.xlu1 %591  ;;  %v735_v62 = vmul.f32 %v1952_v52, %v687_v50 }
  0xbc   : > { %v674_v0 = vmax.f32 %v658_v53, 0.0  ;;  %v675_v3 = vmax.f32 %v659_v54, 0.0  ;;  %v630_v5 = vmul.f32 0.0078125, %v590_v59  ;;  %v631_v7 = vmul.f32 0.0078125, %v592_v60 }
  0xbd   : > { %v750_v2 = vpack.c.bf16 %v735_v62, %v734_v61  ;;  %v691_v53 = vsub.f32 %v2176_v11, %v2298_v34 }
  0xbe   : > { %v1954_v51 = vpop.eup %1953  ;;  %v706_v4 = vadd.f32 1e-05, %v674_v0  ;;  %v707_v55 = vadd.f32 1e-05, %v675_v3  ;;  %v662_v8 = vsub.f32 %v630_v5, %v646_v56  ;;  %v663_v9 = vsub.f32 %v631_v7, %v647_v57 }
  0xbf   : > { %v1956_v12 = vpop.eup %1955  ;;  %v538_v17 = vpop.xlane.xlu0 %537  ;;  %882 = vmatmul.mubr.bf16.vlgmr.msra.gmra.mrb[0].mxu0 %v750_v2  ;;  %v736_v21 = vmul.f32 %v1954_v51, %v688_v16 }
  0xc0   : > { %v540_v18 = vpop.xlane.xlu1 %539  ;;  %1957 = vrsqrt.f32 %v706_v4  ;;  %v678_v19 = vmax.f32 %v662_v8, 0.0  ;;  %v679_v20 = vmax.f32 %v663_v9, 0.0  ;;  %891 = vmatprep.mubr.bf16.mxu0 %v2069_v42  ;;  %v737_v22 = vmul.f32 %v1956_v12, %v689_v13 }
  0xc1   : > { %1959 = vrsqrt.f32 %v707_v55  ;;  %v2319_v1 = vmul.f32 0.0078125, %v538_v17  ;;  %v2321_v58 = vmul.f32 0.0078125, %v540_v18  ;;  %v695_v4 = vsub.f32 %v2190_v15, %v2302_v36 }
  0xc2   : > { %v710_v23 = vadd.f32 1e-05, %v678_v19  ;;  %v711_v24 = vadd.f32 1e-05, %v679_v20  ;;  %v751_v6 = vpack.c.bf16 %v737_v22, %v736_v21 }
  0xc3   : > { %v546_v27 = vpop.xlane.xlu0 %545  ;;  %v644_v38 = vmul.f32 %v2319_v1, %v2319_v1  ;;  %v645_v39 = vmul.f32 %v2321_v58, %v2321_v58 }
  0xc4   : > { %v548_v28 = vpop.xlane.xlu1 %547  ;;  %1961 = vrsqrt.f32 %v710_v23  ;;  %v2323_v63 = vmul.f32 0.0078125, %v546_v27 }
  0xc5   : > { %1963 = vrsqrt.f32 %v711_v24  ;;  %v2325_v31 = vmul.f32 0.0078125, %v548_v28 }
  0xc6   : > { %v648_v54 = vmul.f32 %v2323_v63, %v2323_v63 }
  0xc7   : > { %v586_v32 = vpop.xlane.xlu0 %585  ;;  %892 = vmatmul.mubr.bf16.gmra.mrb[4].mxu0 %v751_v6  ;;  %v649_v56 = vmul.f32 %v2325_v31, %v2325_v31 }
  0xc8   : > { %v588_v37 = vpop.xlane.xlu1 %587  ;;  %v628_v43 = vmul.f32 0.0078125, %v586_v32  ;;  %901 = vmatprep.mubr.bf16.mxu0 %v2069_v42 }
  0xc9   : > { %v629_v44 = vmul.f32 0.0078125, %v588_v37 }
  0xca   : > { %v1958_v48 = vpop.eup %1957  ;;  %v660_v49 = vsub.f32 %v628_v43, %v644_v38 }
  0xcb   : > { %v661_v50 = vsub.f32 %v629_v44, %v645_v39  ;;  %v1960_v52 = vpop.eup %1959  ;;  %v594_v57 = vpop.xlane.xlu0 %593  ;;  %v738_v60 = vmul.f32 %v1958_v48, %v690_v47  ;;  %v692_v44 = vsub.f32 %v2218_v25, %v2319_v1  ;;  %v693_v48 = vsub.f32 %v2221_v26, %v2321_v58 }
  0xcc   : > { %v596_v59 = vpop.xlane.xlu1 %595  ;;  %v676_v61 = vmax.f32 %v660_v49, 0.0  ;;  %v632_v0 = vmul.f32 0.0078125, %v594_v57  ;;  %v739_v3 = vmul.f32 %v1960_v52, %v691_v53  ;;  %v697_v26 = vsub.f32 %v2235_v30, %v2325_v31 }
  0xcd   : > { %v677_v62 = vmax.f32 %v661_v50, 0.0  ;;  %v633_v10 = vmul.f32 0.0078125, %v596_v59 }
  0xce   : > { %v1962_v5 = vpop.eup %1961  ;;  %v708_v7 = vadd.f32 1e-05, %v676_v61  ;;  %v664_v34 = vsub.f32 %v632_v0, %v648_v54  ;;  %v752_v8 = vpack.c.bf16 %v739_v3, %v738_v60  ;;  %v696_v0 = vsub.f32 %v2232_v29, %v2323_v63 }
  0xcf   : > { %v709_v11 = vadd.f32 1e-05, %v677_v62  ;;  %v665_v2 = vsub.f32 %v633_v10, %v649_v56  ;;  %v1964_v51 = vpop.eup %1963  ;;  %v550_v55 = vpop.xlane.xlu0 %549  ;;  %v742_v12 = vmul.f32 %v1962_v5, %v694_v33 }
  0xd0   : > { %v552_v9 = vpop.xlane.xlu1 %551  ;;  %1965 = vrsqrt.f32 %v708_v7  ;;  %v680_v13 = vmax.f32 %v664_v34, 0.0  ;;  %v2344_v17 = vmul.f32 0.0078125, %v550_v55  ;;  %902 = vmatmul.mubr.bf16.gmra.mrb[8].mxu0 %v752_v8  ;;  %v743_v35 = vmul.f32 %v1964_v51, %v695_v4 }
  0xd1   : > { %v681_v16 = vmax.f32 %v665_v2, 0.0  ;;  %1967 = vrsqrt.f32 %v709_v11  ;;  %v2346_v14 = vmul.f32 0.0078125, %v552_v9  ;;  %911 = vmatprep.mubr.bf16.mxu0 %v2069_v42 }
  0xd2   : > { %v712_v18 = vadd.f32 1e-05, %v680_v13  ;;  %v650_v15 = vmul.f32 %v2344_v17, %v2344_v17  ;;  %v754_v20 = vpack.c.bf16 %v743_v35, %v742_v12  ;;  %v698_v29 = vsub.f32 %v2263_v40, %v2344_v17 }
  0xd3   : > { %v713_v19 = vadd.f32 1e-05, %v681_v16  ;;  %v598_v36 = vpop.xlane.xlu0 %597  ;;  %v651_v22 = vmul.f32 %v2346_v14, %v2346_v14  ;;  %v699_v63 = vsub.f32 %v2266_v41, %v2346_v14  ;;  %v759_v41 = vlaneseq }
  0xd4   : > { %v600_v21 = vpop.xlane.xlu1 %599  ;;  %1969 = vrsqrt.f32 %v712_v18  ;;  %v634_v23 = vmul.f32 0.0078125, %v598_v36  ;;  %922 = vmatmul.mubr.bf16.vlgmr.msra.gmra.mrb[0].mxu1 %v754_v20  ;;  %v2070_v18 = vmov 0.0  }
  0xd5   : > { %v635_v24 = vmul.f32 0.0078125, %v600_v21  ;;  %1971 = vrsqrt.f32 %v713_v19  ;;  %931 = vmatprep.mubr.bf16.mxu1 %v2069_v42  ;;  %1090 = vst [vmem:[#allocation2] sm:$0x7] %v2070_v18  ;;  %1091 = vst [vmem:[#allocation2 + $0x83] sm:$0x7] %v2070_v18  ;;  %v2370_v14 = vshrl.u32 %v759_v41, 7 }
  0xd6   : > { %v666_v27 = vsub.f32 %v634_v23, %v650_v15 }
  0xd7   : > { %v667_v28 = vsub.f32 %v635_v24, %v651_v22  ;;  %v554_v6 = vpop.xlane.xlu0 %553  ;;  %v765_v19 = vsub.s32 1, %v2370_v14 }
  0xd8   : > { %v556_v32 = vpop.xlane.xlu1 %555  ;;  %v682_v37 = vmax.f32 %v666_v27, 0.0  ;;  %v620_v39 = vmul.f32 0.0078125, %v554_v6 }
  0xd9   : > { %v683_v38 = vmax.f32 %v667_v28, 0.0  ;;  %v621_v43 = vmul.f32 0.0078125, %v556_v32 }
  0xda   : > { %v1966_v47 = vpop.eup %1965  ;;  %v714_v49 = vadd.f32 1e-05, %v682_v37  ;;  %v652_v53 = vmul.f32 %v620_v39, %v620_v39  ;;  %v700_v9 = vsub.f32 %v2277_v45, %v620_v39 }
  0xdb   : > { %v715_v50 = vadd.f32 1e-05, %v683_v38  ;;  %v1968_v52 = vpop.eup %1967  ;;  %v653_v54 = vmul.f32 %v621_v43, %v621_v43  ;;  %v602_v56 = vpop.xlane.xlu0 %601  ;;  %v740_v59 = vmul.f32 %v1966_v47, %v692_v44  ;;  %v701_v13 = vsub.f32 %v2280_v46, %v621_v43 }
  0xdc   : > { %v604_v57 = vpop.xlane.xlu1 %603  ;;  %1973 = vrsqrt.f32 %v714_v49  ;;  %v636_v60 = vmul.f32 0.0078125, %v602_v56  ;;  %v741_v62 = vmul.f32 %v1968_v52, %v693_v48 }
  0xdd   : > { %v637_v61 = vmul.f32 0.0078125, %v604_v57  ;;  %1975 = vrsqrt.f32 %v715_v50 }
  0xde   : > { %v1970_v25 = vpop.eup %1969  ;;  %v668_v1 = vsub.f32 %v636_v60, %v652_v53  ;;  %v753_v10 = vpack.c.bf16 %v741_v62, %v740_v59  ;;  %v761_v53 = vsub.s32 0, %v2370_v14 }
  0xdf   : > { %v669_v58 = vsub.f32 %v637_v61, %v653_v54  ;;  %v1972_v33 = vpop.eup %1971  ;;  %v744_v3 = vmul.f32 %v1970_v25, %v696_v0 }
  0xe0   : > { %v684_v5 = vmax.f32 %v668_v1, 0.0  ;;  %912 = vmatmul.mubr.bf16.gmra.mrb[12].mxu0 %v753_v10  ;;  %v745_v11 = vmul.f32 %v1972_v33, %v697_v26 }
  0xe1   : > { %v685_v7 = vmax.f32 %v669_v58, 0.0 }
  0xe2   : > { %v716_v34 = vadd.f32 1e-05, %v684_v5  ;;  %v755_v51 = vpack.c.bf16 %v745_v11, %v744_v3 }
  0xe3   : > { %v717_v2 = vadd.f32 1e-05, %v685_v7 }
  0xe4   : > { %1977 = vrsqrt.f32 %v716_v34  ;;  %932 = vmatmul.mubr.bf16.gmra.mrb[4].mxu1 %v755_v51 }
  0xe5   : > { %1979 = vrsqrt.f32 %v717_v2  ;;  %941 = vmatprep.mubr.bf16.mxu1 %v2069_v42 }
  0xe6   : > { %v1974_v30 = vpop.eup %1973 }
  0xe7   : > { %v1976_v31 = vpop.eup %1975  ;;  %v746_v4 = vmul.f32 %v1974_v30, %v698_v29 }
  0xe8   : > { %v747_v55 = vmul.f32 %v1976_v31, %v699_v63 }
  0xea   : > { %v756_v8 = vpack.c.bf16 %v747_v55, %v746_v4  ;;  %v1250_v4 = vsub.s32 3, %v2370_v14 }
  0xec   : > { %942 = vmatmul.mubr.bf16.gmra.mrb[8].mxu1 %v756_v8 }
  0xed   : > { %951 = vmatprep.mubr.bf16.mxu1 %v2069_v42  ;;  %v507_v42 = vld [vmem:[%s2709_s4] sm:$0x3] }
  0xee   : > { %v1978_v12 = vpop.eup %1977  ;;  %v2378_v45 = vrot.slane %v507_v42, %v765_v19  ;;  %v2397_v25 = vrot.slane %v507_v42, %v761_v53 }
  0xef   : > { %v1980_v40 = vpop.eup %1979  ;;  %v748_v16 = vmul.f32 %v1978_v12, %v700_v9  ;;  %v508_v9 = vld [vmem:[%s2710_s5] sm:$0x7f]  ;;  %v1198_v12 = vsub.s32 2, %v2370_v14 }
  0xf0   : > { %v749_v17 = vmul.f32 %v1980_v40, %v701_v13  ;;  %v1302_v13 = vsub.s32 4, %v2370_v14  ;;  %v2419_v41 = vrot.slane %v508_v9, %v761_v53  ;;  %v2423_v42 = vrot.slane %v508_v9, %v765_v19 }
  0xf2   : > { %v757_v35 = vpack.c.bf16 %v749_v17, %v748_v16  ;;  %v1354_v16 = vsub.s32 5, %v2370_v14  ;;  %v2435_v19 = vrot.slane %v508_v9, %v1302_v13 }
  0xf4   : > { %952 = vmatmul.mubr.bf16.gmra.mrb[12].mxu1 %v757_v35 }
 0x192   : > { %v883_v46 = vpop.f32.mrb[0].mxu0 }
 0x193   : > { %v885_v15 = vpop.f32.mrb[1].mxu0  ;;  %v884_v34 = vadd.f32 %v883_v46, %v2397_v25 }
 0x194   : > { %v886_v36 = vadd.f32 %v885_v15, %v2378_v45  ;;  %v887_v20 = vpop.f32.mrb[2].mxu0 }
 0x195   : > { %v889_v21 = vpop.f32.mrb[3].mxu0  ;;  %v888_v30 = vadd.f32 %v887_v20, %v2397_v25 }
 0x196   : > { %v1784_v22 = vmul.f32 -1.442695, %v886_v36  ;;  %v890_v23 = vadd.f32 %v889_v21, %v2378_v45  ;;  %v2428_v21 = vrot.slane %v508_v9, %v1250_v4 }
 0x198   : > { %1981 = vpow2.f32 %v1784_v22  ;;  %v1785_v24 = vmul.f32 -1.442695, %v890_v23 }
 0x19a   : > { %1983 = vpow2.f32 %v1785_v24  ;;  %v2382_v27 = vpop.f32.mrb[4].mxu0 }
 0x19b   : > { %v895_v28 = vpop.f32.mrb[5].mxu0  ;;  %v894_v46 = vadd.f32 %v2382_v27, %v2397_v25 }
 0x19c   : > { %v896_v6 = vadd.f32 %v895_v28, %v2378_v45  ;;  %v2385_v32 = vpop.f32.mrb[6].mxu0 }
 0x19d   : > { %v899_v37 = vpop.f32.mrb[7].mxu0 }
 0x19e   : > { %v1786_v38 = vmul.f32 -1.442695, %v896_v6  ;;  %v900_v39 = vadd.f32 %v899_v37, %v2378_v45  ;;  %v2433_v6 = vrot.slane %v508_v9, %v1198_v12  ;;  %v1406_v37 = vsub.s32 6, %v2370_v14 }
 0x1a0   : > { %1985 = vpow2.f32 %v1786_v38  ;;  %v1787_v43 = vmul.f32 -1.442695, %v900_v39 }
 0x1a2   : > { %v1982_v44 = vpop.eup %1981  ;;  %1987 = vpow2.f32 %v1787_v43 }
 0x1a3   : > { %v1010_v47 = vadd.f32 1.0, %v1982_v44  ;;  %v2388_v49 = vpop.f32.mrb[8].mxu0 }
 0x1a4   : > { %v1984_v48 = vpop.eup %1983  ;;  %v905_v52 = vpop.f32.mrb[9].mxu0 }
 0x1a5   : > { %1989 = vrcp.f32 %v1010_v47  ;;  %v1011_v50 = vadd.f32 1.0, %v1984_v48  ;;  %v906_v54 = vadd.f32 %v905_v52, %v2378_v45  ;;  %v2392_v56 = vpop.f32.mrb[10].mxu0  ;;  %v2438_v48 = vrot.slane %v508_v9, %v1354_v16 }
 0x1a6   : > { %v909_v57 = vpop.f32.mrb[11].mxu0 }
 0x1a7   : > { %1991 = vrcp.f32 %v1011_v50  ;;  %v1788_v59 = vmul.f32 -1.442695, %v906_v54  ;;  %v910_v60 = vadd.f32 %v909_v57, %v2378_v45  ;;  %v2395_v61 = vpop.f32.mrb[0].mxu1  ;;  %v898_v50 = vadd.f32 %v2385_v32, %v2397_v25 }
 0x1a8   : > { %v925_v62 = vpop.f32.mrb[1].mxu1 }
 0x1a9   : > { %1993 = vpow2.f32 %v1788_v59  ;;  %v1789_v26 = vmul.f32 -1.442695, %v910_v60  ;;  %v926_v1 = vadd.f32 %v925_v62, %v2378_v45  ;;  %v2400_v58 = vpop.f32.mrb[2].mxu1 }
 0x1aa   : > { %v1986_v0 = vpop.eup %1985  ;;  %v929_v33 = vpop.f32.mrb[3].mxu1 }
 0x1ab   : > { %v1012_v10 = vadd.f32 1.0, %v1986_v0  ;;  %1995 = vpow2.f32 %v1789_v26  ;;  %v1792_v5 = vmul.f32 -1.442695, %v926_v1  ;;  %v930_v7 = vadd.f32 %v929_v33, %v2378_v45 }
 0x1ac   : > { %v1988_v3 = vpop.eup %1987 }
 0x1ad   : > { %1997 = vrcp.f32 %v1012_v10  ;;  %v1013_v11 = vadd.f32 1.0, %v1988_v3  ;;  %v1793_v2 = vmul.f32 -1.442695, %v930_v7 }
 0x1ae   : > { %1999 = vpow2.f32 %v1792_v5 }
 0x1af   : > { %v1990_v51 = vpop.eup %1989  ;;  %2001 = vrcp.f32 %v1013_v11 }
 0x1b0   : > { %v1058_v29 = vmul.f32 %v1990_v51, %v884_v34  ;;  %2003 = vpow2.f32 %v1793_v2  ;;  %v2453_v51 = vrot.slane %v508_v9, %v1406_v37  ;;  %v924_v9 = vadd.f32 %v2395_v61, %v2397_v25 }
 0x1b1   : > { %v1992_v63 = vpop.eup %1991  ;;  %v928_v61 = vadd.f32 %v2400_v58, %v2397_v25 }
 0x1b2   : > { %1074 = vst [vmem:[#allocation2 + $0x3] sm:$0xff] %v1058_v29  ;;  %v2405_v31 = vmul.f32 %v1992_v63, %v888_v30  ;;  %v1252_v34 = vmul.f32 %v2428_v21, %v1058_v29  ;;  %v904_v30 = vadd.f32 %v2388_v49, %v2397_v25  ;;  %v908_v63 = vadd.f32 %v2392_v56, %v2397_v25 }
 0x1b3   : > { %v2408_v55 = vpop.f32.mrb[12].mxu0  ;;  %v1994_v8 = vpop.eup %1993 }
 0x1b4   : > { %1075 = vst [vmem:[#allocation2 + $0xb] sm:$0xff] %v2405_v31  ;;  %v915_v40 = vpop.f32.mrb[13].mxu0  ;;  %v1014_v17 = vadd.f32 1.0, %v1994_v8  ;;  %v1253_v29 = vmul.f32 %v2428_v21, %v2405_v31 }
 0x1b5   : > { %v2417_v35 = vpop.f32.mrb[14].mxu0  ;;  %v1996_v18 = vpop.eup %1995  ;;  %v916_v15 = vadd.f32 %v915_v40, %v2378_v45 }
 0x1b6   : > { %v919_v36 = vpop.f32.mrb[15].mxu0  ;;  %2005 = vrcp.f32 %v1014_v17  ;;  %v1015_v22 = vadd.f32 1.0, %v1996_v18 }
 0x1b7   : > { %v1998_v20 = vpop.eup %1997  ;;  %v920_v23 = vadd.f32 %v919_v36, %v2378_v45  ;;  %v2431_v24 = vpop.f32.mrb[4].mxu1  ;;  %v1790_v14 = vmul.f32 -1.442695, %v916_v15 }
 0x1b8   : > { %v2000_v28 = vpop.eup %1999  ;;  %v1060_v27 = vmul.f32 %v1998_v20, %v894_v46  ;;  %v935_v38 = vpop.f32.mrb[5].mxu1  ;;  %2007 = vrcp.f32 %v1015_v22 }
 0x1b9   : > { %v2002_v39 = vpop.eup %2001  ;;  %v1092_v43 = vld [vmem:[#allocation2] sm:$0xff]  ;;  %v1018_v52 = vadd.f32 1.0, %v2000_v28  ;;  %v1791_v59 = vmul.f32 -1.442695, %v920_v23  ;;  %v2444_v60 = vpop.f32.mrb[6].mxu1  ;;  %v936_v32 = vadd.f32 %v935_v38, %v2378_v45 }
 0x1ba   : > { %v1128_v44 = vld [vmem:[#allocation2 + $0x1] sm:$0xff]  ;;  %v2004_v53 = vpop.eup %2003  ;;  %v1112_v54 = vmul.f32 %v2419_v41, %v1092_v43  ;;  %1076 = vst [vmem:[#allocation2 + $0x13] sm:$0xff] %v1060_v27  ;;  %v2446_v1 = vmul.f32 %v2002_v39, %v898_v50  ;;  %v939_v11 = vpop.f32.mrb[7].mxu1  ;;  %v1254_v23 = vmul.f32 %v2428_v21, %v1060_v27 }
 0x1bb   : > { %v1180_v47 = vld [vmem:[#allocation2 + $0x2] sm:$0xff]  ;;  %v1148_v57 = vmul.f32 %v2423_v42, %v1128_v44  ;;  %v1181_v26 = vld [vmem:[#allocation2 + $0xa] sm:$0xff]  ;;  %2009 = vrcp.f32 %v1018_v52  ;;  %v1019_v10 = vadd.f32 1.0, %v2004_v53  ;;  %v1794_v40 = vmul.f32 -1.442695, %v936_v32 }
 0x1bc   : > { %v1093_v62 = vld [vmem:[#allocation2 + $0x8] sm:$0xff]  ;;  %v1200_v3 = vmul.f32 %v2433_v6, %v1180_v47  ;;  %1077 = vst [vmem:[#allocation2 + $0x1b] sm:$0xff] %v2446_v1  ;;  %v1201_v12 = vmul.f32 %v2433_v6, %v1181_v26  ;;  %v940_v28 = vadd.f32 %v939_v11, %v2378_v45 }
 0x1bd   : > { %v1129_v0 = vld [vmem:[#allocation2 + $0x9] sm:$0xff]  ;;  %v1164_v33 = vadd.f32 %v1148_v57, %v1112_v54  ;;  %v1113_v5 = vmul.f32 %v2419_v41, %v1093_v62  ;;  %2011 = vrcp.f32 %v1019_v10 }
 0x1be   : > { %v1149_v7 = vmul.f32 %v2423_v42, %v1129_v0  ;;  %v1284_v2 = vld [vmem:[#allocation2 + $0x4] sm:$0xff]  ;;  %2013 = vpow2.f32 %v1790_v14 }
 0x1bf   : > { %v1216_v4 = vadd.f32 %v1200_v3, %v1164_v33  ;;  %v1336_v13 = vld [vmem:[#allocation2 + $0x5] sm:$0xff]  ;;  %v2465_v16 = vpop.f32.mrb[8].mxu1  ;;  %v1304_v56 = vmul.f32 %v2435_v19, %v1284_v2  ;;  %2015 = vpow2.f32 %v1791_v59 }
 0x1c0   : > { %v1165_v8 = vadd.f32 %v1149_v7, %v1113_v5  ;;  %v1388_v18 = vld [vmem:[#allocation2 + $0x6] sm:$0xff]  ;;  %v945_v46 = vpop.f32.mrb[9].mxu1  ;;  %v2006_v15 = vpop.eup %2005  ;;  %v1356_v36 = vmul.f32 %v2438_v48, %v1336_v13  ;;  %2017 = vpow2.f32 %v1794_v40 }
 0x1c1   : > { %v1268_v49 = vadd.f32 %v1252_v34, %v1216_v4  ;;  %v1094_v20 = vld [vmem:[#allocation2 + $0x10] sm:$0xff]  ;;  %v2473_v37 = vpop.f32.mrb[10].mxu1  ;;  %v1408_v27 = vmul.f32 %v2453_v51, %v1388_v18  ;;  %v2482_v10 = vmul.f32 %v2006_v15, %v904_v30  ;;  %v1795_v30 = vmul.f32 -1.442695, %v940_v28 }
 0x1c2   : > { %v1217_v17 = vadd.f32 %v1201_v12, %v1165_v8  ;;  %v1130_v22 = vld [vmem:[#allocation2 + $0x11] sm:$0xff]  ;;  %v1114_v43 = vmul.f32 %v2419_v41, %v1094_v20  ;;  %v2477_v52 = vpop.f32.mrb[11].mxu1  ;;  %v2008_v53 = vpop.eup %2007  ;;  %v1255_v18 = vmul.f32 %v2428_v21, %v2446_v1 }
 0x1c3   : > { %v1182_v31 = vld [vmem:[#allocation2 + $0x12] sm:$0xff]  ;;  %v1320_v39 = vadd.f32 %v1304_v56, %v1268_v49  ;;  %v1150_v44 = vmul.f32 %v2423_v42, %v1130_v22  ;;  %v1183_v26 = vld [vmem:[#allocation2 + $0x1a] sm:$0xff]  ;;  %v2484_v32 = vmul.f32 %v2008_v53, %v908_v63  ;;  %1078 = vst [vmem:[#allocation2 + $0x23] sm:$0xff] %v2482_v10  ;;  %v946_v63 = vadd.f32 %v945_v46, %v2378_v45 }
 0x1c4   : > { %v1269_v38 = vadd.f32 %v1253_v29, %v1217_v17  ;;  %v1285_v47 = vld [vmem:[#allocation2 + $0xc] sm:$0xff]  ;;  %v1202_v54 = vmul.f32 %v2433_v6, %v1182_v31  ;;  %v1095_v62 = vld [vmem:[#allocation2 + $0x18] sm:$0xff]  ;;  %v1203_v40 = vmul.f32 %v2433_v6, %v1183_v26  ;;  %2019 = vpow2.f32 %v1795_v30 }
 0x1c5   : > { %v1337_v50 = vld [vmem:[#allocation2 + $0xd] sm:$0xff]  ;;  %v1305_v58 = vmul.f32 %v2435_v19, %v1285_v47  ;;  %v1372_v14 = vadd.f32 %v1356_v36, %v1320_v39  ;;  %v1166_v59 = vadd.f32 %v1150_v44, %v1114_v43  ;;  %v1131_v0 = vld [vmem:[#allocation2 + $0x19] sm:$0xff]  ;;  %v2010_v33 = vpop.eup %2009  ;;  %v1115_v7 = vmul.f32 %v2419_v41, %v1095_v62  ;;  %1079 = vst [vmem:[#allocation2 + $0x2b] sm:$0xff] %v2484_v32 }
 0x1c6   : > { %v1389_v57 = vld [vmem:[#allocation2 + $0xe] sm:$0xff]  ;;  %v1357_v5 = vmul.f32 %v2438_v48, %v1337_v50  ;;  %v1151_v11 = vmul.f32 %v2423_v42, %v1131_v0  ;;  %v2500_v36 = vmul.f32 %v2010_v33, %v924_v9  ;;  %v1796_v44 = vmul.f32 -1.442695, %v946_v63 }
 0x1c7   : > { %v1321_v3 = vadd.f32 %v1305_v58, %v1269_v38  ;;  %v1286_v34 = vld [vmem:[#allocation2 + $0x14] sm:$0xff]  ;;  %v1218_v2 = vadd.f32 %v1202_v54, %v1166_v59  ;;  %v1409_v4 = vmul.f32 %v2453_v51, %v1389_v57  ;;  %v1424_v12 = vadd.f32 %v1408_v27, %v1372_v14  ;;  %v2495_v49 = vpop.f32.mrb[12].mxu1  ;;  %v2012_v17 = vpop.eup %2011 }
 0x1c8   : > { %v1338_v8 = vld [vmem:[#allocation2 + $0x15] sm:$0xff]  ;;  %v1167_v29 = vadd.f32 %v1151_v11, %v1115_v7  ;;  %v1306_v15 = vmul.f32 %v2435_v19, %v1286_v34  ;;  %v2502_v20 = vpop.f32.mrb[13].mxu1  ;;  %v2014_v46 = vpop.eup %2013  ;;  %v2505_v39 = vmul.f32 %v2012_v17, %v928_v61  ;;  %1082 = vst [vmem:[#allocation2 + $0x43] sm:$0xff] %v2500_v36 }
 0x1c9   : > { %v1373_v13 = vadd.f32 %v1357_v5, %v1321_v3  ;;  %v1270_v56 = vadd.f32 %v1254_v23, %v1218_v2  ;;  %v1358_v28 = vmul.f32 %v2438_v48, %v1338_v8  ;;  %v1390_v38 = vld [vmem:[#allocation2 + $0x16] sm:$0xff]  ;;  %v2507_v43 = vpop.f32.mrb[14].mxu1  ;;  %v2016_v23 = vpop.eup %2015  ;;  %v1016_v9 = vadd.f32 1.0, %v2014_v46 }
 0x1ca   : > { %v1219_v31 = vadd.f32 %v1203_v40, %v1167_v29  ;;  %v2515_v47 = vpop.f32.mrb[15].mxu1  ;;  %v1462_v50 = vmul.f32 %v1424_v12, %v1424_v12  ;;  %1083 = vst [vmem:[#allocation2 + $0x4b] sm:$0xff] %v2505_v39  ;;  %v1410_v58 = vmul.f32 %v2453_v51, %v1390_v38  ;;  %v1017_v57 = vadd.f32 1.0, %v2016_v23  ;;  %v2018_v14 = vpop.eup %2017  ;;  %v1096_v0 = vld [vmem:[#allocation2 + $0x20] sm:$0xff] }
 0x1cb   : > { %v1425_v22 = vadd.f32 %v1409_v4, %v1373_v13  ;;  %v1322_v1 = vadd.f32 %v1306_v15, %v1270_v56  ;;  %2021 = vrcp.f32 %v1016_v9  ;;  %v1132_v26 = vld [vmem:[#allocation2 + $0x21] sm:$0xff]  ;;  %v1116_v5 = vmul.f32 %v2419_v41, %v1096_v0 }
 0x1cc   : > { %v1271_v62 = vadd.f32 %v1255_v18, %v1219_v31  ;;  %v1184_v33 = vld [vmem:[#allocation2 + $0x22] sm:$0xff]  ;;  %2023 = vpow2.f32 %v1796_v44  ;;  %v1152_v7 = vmul.f32 %v2423_v42, %v1132_v26  ;;  %v1256_v15 = vmul.f32 %v2428_v21, %v2482_v10 }
 0x1cd   : > { %v1440_v61 = vadd.f32 %v1425_v22, %v1424_v12  ;;  %v1463_v53 = vmul.f32 %v1425_v22, %v1425_v22  ;;  %v1839_v27 = vpack.c.bf16 %v1425_v22, %v1424_v12  ;;  %v1374_v54 = vadd.f32 %v1358_v28, %v1322_v1  ;;  %v1287_v11 = vld [vmem:[#allocation2 + $0x1c] sm:$0xff]  ;;  %v1097_v40 = vld [vmem:[#allocation2 + $0x28] sm:$0xff] }
 0x1ce   : > { %v1339_v34 = vld [vmem:[#allocation2 + $0x1d] sm:$0xff]  ;;  %v1307_v2 = vmul.f32 %v2435_v19, %v1287_v11  ;;  %2025 = vrcp.f32 %v1017_v57  ;;  %v1168_v30 = vadd.f32 %v1152_v7, %v1116_v5  ;;  %v1204_v63 = vmul.f32 %v2433_v6, %v1184_v33  ;;  %v1133_v46 = vld [vmem:[#allocation2 + $0x29] sm:$0xff]  ;;  %v2020_v9 = vpop.eup %2019 }
 0x1cf   : > { %v1478_v59 = vadd.f32 %v1463_v53, %v1462_v50  ;;  %1840 = vst [vmem:[%s2512_s10] sm:$0xff] %v1839_v27   ;;  %v1426_v3 = vadd.f32 %v1410_v58, %v1374_v54  ;;  %v1391_v12 = vld [vmem:[#allocation2 + $0x1e] sm:$0xff]  ;;  %v1359_v29 = vmul.f32 %v2438_v48, %v1339_v34  ;;  %v1020_v28 = vadd.f32 1.0, %v2018_v14  ;;  %v1392_v54 = vld [vmem:[#allocation2 + $0x26] sm:$0xff] }
 0x1d0   : > { %v1323_v13 = vadd.f32 %v1307_v2, %v1271_v62  ;;  %v1288_v17 = vld [vmem:[#allocation2 + $0x24] sm:$0xff]  ;;  %v1220_v18 = vadd.f32 %v1204_v63, %v1168_v30  ;;  %v1411_v23 = vmul.f32 %v2453_v51, %v1391_v12  ;;  %v1117_v50 = vmul.f32 %v2419_v41, %v1097_v40 }
 0x1d1   : > { %v1441_v4 = vadd.f32 %v1440_v61, %v1426_v3  ;;  %v1464_v8 = vmul.f32 %v1426_v3, %v1426_v3  ;;  %v1101_v22 = vld [vmem:[#allocation2 + $0x48] sm:$0xff]  ;;  %v1308_v61 = vmul.f32 %v2435_v19, %v1288_v17  ;;  %v914_v53 = vadd.f32 %v2408_v55, %v2397_v25 }
 0x1d2   : > { %v1137_v31 = vld [vmem:[#allocation2 + $0x49] sm:$0xff]  ;;  %v1375_v38 = vadd.f32 %v1359_v29, %v1323_v13  ;;  %v1272_v44 = vadd.f32 %v1256_v15, %v1220_v18  ;;  %v1153_v10 = vmul.f32 %v2423_v42, %v1133_v46  ;;  %v1121_v58 = vmul.f32 %v2419_v41, %v1101_v22 }
 0x1d3   : > { %v1479_v56 = vadd.f32 %v1478_v59, %v1464_v8  ;;  %v1340_v1 = vld [vmem:[#allocation2 + $0x25] sm:$0xff]  ;;  %v1157_v57 = vmul.f32 %v2423_v42, %v1137_v31  ;;  %v918_v0 = vadd.f32 %v2417_v35, %v2397_v25  ;;  %2027 = vrcp.f32 %v1020_v28 }
 0x1d4   : > { %v1427_v27 = vadd.f32 %v1411_v23, %v1375_v38  ;;  %v1324_v59 = vadd.f32 %v1308_v61, %v1272_v44  ;;  %v1360_v62 = vmul.f32 %v2438_v48, %v1340_v1  ;;  %v1185_v7 = vld [vmem:[#allocation2 + $0x2a] sm:$0xff]  ;;  %v1021_v11 = vadd.f32 1.0, %v2020_v9 }
 0x1d5   : > { %v2022_v14 = vpop.eup %2021  ;;  %v1412_v2 = vmul.f32 %v2453_v51, %v1392_v54  ;;  %v1189_v8 = vld [vmem:[#allocation2 + $0x4a] sm:$0xff]  ;;  %v950_v63 = vadd.f32 %v2477_v52, %v2378_v45  ;;  %v1169_v29 = vadd.f32 %v1153_v10, %v1117_v50  ;;  %v1173_v35 = vadd.f32 %v1157_v57, %v1121_v58 }
 0x1d6   : > { %v2024_v26 = vpop.eup %2023  ;;  %v1442_v33 = vadd.f32 %v1441_v4, %v1427_v27  ;;  %v1465_v55 = vmul.f32 %v1427_v27, %v1427_v27  ;;  %v1844_v5 = vpack.c.bf16 %v1427_v27, %v1426_v3  ;;  %v1376_v34 = vadd.f32 %v1360_v62, %v1324_v59  ;;  %v1292_v38 = vld [vmem:[#allocation2 + $0x44] sm:$0xff] }
 0x1d7   : > { %v1064_v30 = vmul.f32 %v2022_v14, %v914_v53  ;;  %v1022_v40 = vadd.f32 1.0, %v2024_v26  ;;  %v1205_v4 = vmul.f32 %v2433_v6, %v1185_v7  ;;  %v1209_v18 = vmul.f32 %v2433_v6, %v1189_v8  ;;  %v1344_v23 = vld [vmem:[#allocation2 + $0x45] sm:$0xff] }
 0x1d8   : > { %v2026_v12 = vpop.eup %2025  ;;  %v1480_v13 = vadd.f32 %v1479_v56, %v1465_v55  ;;  %1876 = vst [vmem:[%s2512_s10 + $0x8] sm:$0xff] %v1844_v5   ;;  %v2543_v17 = vadd.f32 %v1412_v2, %v1376_v34  ;;  %2029 = vrcp.f32 %v1021_v11  ;;  %v956_v15 = vadd.f32 %v2502_v20, %v2378_v45  ;;  %v1396_v9 = vld [vmem:[#allocation2 + $0x46] sm:$0xff] }
 0x1d9   : > { %1080 = vst [vmem:[#allocation2 + $0x33] sm:$0xff] %v1064_v30  ;;  %v1065_v3 = vmul.f32 %v2026_v12, %v918_v0  ;;  %v960_v52 = vadd.f32 %v2515_v47, %v2378_v45  ;;  %2031 = vrcp.f32 %v1022_v40  ;;  %v1797_v22 = vmul.f32 -1.442695, %v950_v63 }
 0x1da   : > { %v2551_v56 = vadd.f32 %v1442_v33, %v2543_v17  ;;  %v1466_v46 = vmul.f32 %v2543_v17, %v2543_v17  ;;  %v1221_v31 = vadd.f32 %v1205_v4, %v1169_v29  ;;  %v1225_v28 = vadd.f32 %v1209_v18, %v1173_v35 }
 0x1db   : > { %1081 = vst [vmem:[#allocation2 + $0x3b] sm:$0xff] %v1065_v3  ;;  %v934_v20 = vadd.f32 %v2431_v24, %v2397_v25  ;;  %v2561_v45 = vadd.f32 %v2444_v60, %v2397_v25  ;;  %v1798_v47 = vmul.f32 -1.442695, %v956_v15  ;;  %v1257_v44 = vmul.f32 %v2428_v21, %v2484_v32 }
 0x1dc   : > { %v2555_v1 = vadd.f32 %v1480_v13, %v1466_v46  ;;  %v1261_v50 = vmul.f32 %v2428_v21, %v2505_v39  ;;  %v2569_v61 = vadd.f32 %v2465_v16, %v2397_v25  ;;  %v1799_v53 = vmul.f32 -1.442695, %v960_v52 }
 0x1dd   : > { %v2028_v27 = vpop.eup %2027  ;;  %v2573_v24 = vmul.f32 %v2428_v21, %v2500_v36  ;;  %v2576_v60 = vmul.f32 %v2435_v19, %v1292_v38  ;;  %v2579_v10 = vmul.f32 %v2438_v48, %v1344_v23  ;;  %2033 = vpow2.f32 %v1797_v22 }
 0x1de   : > { %v1273_v32 = vadd.f32 %v1257_v44, %v1221_v31  ;;  %v2581_v54 = vadd.f32 %v1261_v50, %v1225_v28  ;;  %v2584_v39 = vmul.f32 %v2453_v51, %v1396_v9  ;;  %v2586_v14 = vmul.f32 %v2028_v27, %v934_v20 }
 0x1df   : > { %v1258_v62 = vmul.f32 %v2428_v21, %v1064_v30  ;;  %2035 = vpow2.f32 %v1798_v47  ;;  %v1259_v2 = vmul.f32 %v2428_v21, %v1065_v3 }
 0x1e0   : > { %v1098_v16 = vld [vmem:[#allocation2 + $0x30] sm:$0xff]  ;;  %1084 = vst [vmem:[#allocation2 + $0x53] sm:$0xff] %v2586_v14  ;;  %2037 = vpow2.f32 %v1799_v53 }
 0x1e1   : > { %v1134_v58 = vld [vmem:[#allocation2 + $0x31] sm:$0xff]  ;;  %v1118_v36 = vmul.f32 %v2419_v41, %v1098_v16 }
 0x1e2   : > { %v1186_v57 = vld [vmem:[#allocation2 + $0x32] sm:$0xff]  ;;  %v1154_v59 = vmul.f32 %v2423_v42, %v1134_v58  ;;  %v1100_v11 = vld [vmem:[#allocation2 + $0x40] sm:$0xff]  ;;  %v2030_v40 = vpop.eup %2029 }
 0x1e3   : > { %v1289_v0 = vld [vmem:[#allocation2 + $0x2c] sm:$0xff]  ;;  %v1206_v55 = vmul.f32 %v2433_v6, %v1186_v57  ;;  %v1099_v7 = vld [vmem:[#allocation2 + $0x38] sm:$0xff]  ;;  %v1120_v30 = vmul.f32 %v2419_v41, %v1100_v11  ;;  %v1136_v12 = vld [vmem:[#allocation2 + $0x41] sm:$0xff]  ;;  %v2032_v31 = vpop.eup %2031 }
 0x1e4   : > { %v1341_v26 = vld [vmem:[#allocation2 + $0x2d] sm:$0xff]  ;;  %v1309_v5 = vmul.f32 %v2435_v19, %v1289_v0  ;;  %v1135_v34 = vld [vmem:[#allocation2 + $0x39] sm:$0xff]  ;;  %v1170_v8 = vadd.f32 %v1154_v59, %v1118_v36  ;;  %v1119_v63 = vmul.f32 %v2419_v41, %v1099_v7  ;;  %v1188_v35 = vld [vmem:[#allocation2 + $0x42] sm:$0xff]  ;;  %v1156_v3 = vmul.f32 %v2423_v42, %v1136_v12 }
 0x1e5   : > { %v1393_v33 = vld [vmem:[#allocation2 + $0x2e] sm:$0xff]  ;;  %v1155_v13 = vmul.f32 %v2423_v42, %v1135_v34  ;;  %v1187_v29 = vld [vmem:[#allocation2 + $0x3a] sm:$0xff]  ;;  %v1361_v18 = vmul.f32 %v2438_v48, %v1341_v26  ;;  %v1208_v9 = vmul.f32 %v2433_v6, %v1188_v35  ;;  %v2608_v26 = vmul.f32 %v2030_v40, %v2561_v45 }
 0x1e6   : > { %v1325_v4 = vadd.f32 %v1309_v5, %v1273_v32  ;;  %v1413_v15 = vmul.f32 %v2453_v51, %v1393_v33  ;;  %v1290_v52 = vld [vmem:[#allocation2 + $0x34] sm:$0xff]  ;;  %v1291_v46 = vld [vmem:[#allocation2 + $0x3c] sm:$0xff]  ;;  %v1222_v28 = vadd.f32 %v1206_v55, %v1170_v8  ;;  %v1207_v23 = vmul.f32 %v2433_v6, %v1187_v29 }
 0x1e7   : > { %v1342_v22 = vld [vmem:[#allocation2 + $0x35] sm:$0xff]  ;;  %v1171_v38 = vadd.f32 %v1155_v13, %v1119_v63  ;;  %v1343_v20 = vld [vmem:[#allocation2 + $0x3d] sm:$0xff]  ;;  %v1172_v44 = vadd.f32 %v1156_v3, %v1120_v30  ;;  %v1310_v50 = vmul.f32 %v2435_v19, %v1290_v52  ;;  %v1311_v53 = vmul.f32 %v2435_v19, %v1291_v46  ;;  %v2034_v55 = vpop.eup %2033  ;;  %1085 = vst [vmem:[#allocation2 + $0x5b] sm:$0xff] %v2608_v26 }
 0x1e8   : > { %v1377_v47 = vadd.f32 %v1361_v18, %v1325_v4  ;;  %v1394_v27 = vld [vmem:[#allocation2 + $0x36] sm:$0xff]  ;;  %v1395_v32 = vld [vmem:[#allocation2 + $0x3e] sm:$0xff]  ;;  %v1274_v16 = vadd.f32 %v1258_v62, %v1222_v28  ;;  %v1362_v57 = vmul.f32 %v2438_v48, %v1342_v22  ;;  %v1363_v36 = vmul.f32 %v2438_v48, %v1343_v20  ;;  %v1397_v28 = vld [vmem:[#allocation2 + $0x4e] sm:$0xff] }
 0x1e9   : > { %v1223_v58 = vadd.f32 %v1207_v23, %v1171_v38  ;;  %v1224_v0 = vadd.f32 %v1208_v9, %v1172_v44  ;;  %v2611_v33 = vmul.f32 %v2032_v31, %v2569_v61  ;;  %v1414_v11 = vmul.f32 %v2453_v51, %v1394_v27  ;;  %v1102_v34 = vld [vmem:[#allocation2 + $0x50] sm:$0xff] }
 0x1ea   : > { %v1429_v59 = vadd.f32 %v1413_v15, %v1377_v47  ;;  %v1326_v7 = vadd.f32 %v1310_v50, %v1274_v16  ;;  %v1415_v62 = vmul.f32 %v2453_v51, %v1395_v32  ;;  %v1138_v8 = vld [vmem:[#allocation2 + $0x51] sm:$0xff]  ;;  %v1122_v40 = vmul.f32 %v2419_v41, %v1102_v34 }
 0x1eb   : > { %v1275_v5 = vadd.f32 %v1259_v2, %v1223_v58  ;;  %v1276_v45 = vadd.f32 %v2573_v24, %v1224_v0  ;;  %v1190_v13 = vld [vmem:[#allocation2 + $0x52] sm:$0xff]  ;;  %1086 = vst [vmem:[#allocation2 + $0x63] sm:$0xff] %v2611_v33  ;;  %v2036_v2 = vpop.eup %2035  ;;  %v1158_v4 = vmul.f32 %v2423_v42, %v1138_v8  ;;  %v1023_v3 = vadd.f32 1.0, %v2034_v55 }
 0x1ec   : > { %v1444_v63 = vadd.f32 %v2551_v56, %v1429_v59  ;;  %v1467_v30 = vmul.f32 %v1429_v59, %v1429_v59  ;;  %v1849_v12 = vpack.c.bf16 %v1429_v59, %v2543_v17  ;;  %v1293_v61 = vld [vmem:[#allocation2 + $0x4c] sm:$0xff]  ;;  %v1378_v35 = vadd.f32 %v1362_v57, %v1326_v7  ;;  %v2622_v18 = vpop.eup %2037 }
 0x1ed   : > { %v1327_v29 = vadd.f32 %v1311_v53, %v1275_v5  ;;  %v1345_v56 = vld [vmem:[#allocation2 + $0x4d] sm:$0xff]  ;;  %v1328_v24 = vadd.f32 %v2576_v60, %v1276_v45  ;;  %v1313_v15 = vmul.f32 %v2435_v19, %v1293_v61  ;;  %v1174_v22 = vadd.f32 %v1158_v4, %v1122_v40 }
 0x1ee   : > { %v1482_v17 = vadd.f32 %v2555_v1, %v1467_v30  ;;  %1877 = vst [vmem:[%s2512_s10 + $0x10] sm:$0xff] %v1849_v12   ;;  %v1430_v46 = vadd.f32 %v1414_v11, %v1378_v35  ;;  %v1210_v31 = vmul.f32 %v2433_v6, %v1190_v13  ;;  %v1262_v23 = vmul.f32 %v2428_v21, %v2586_v14  ;;  %v1103_v14 = vld [vmem:[#allocation2 + $0x58] sm:$0xff] }
 0x1ef   : > { %v1379_v52 = vadd.f32 %v1363_v36, %v1327_v29  ;;  %v1380_v38 = vadd.f32 %v2579_v10, %v1328_v24  ;;  %v1329_v9 = vadd.f32 %v1313_v15, %v2581_v54  ;;  %v1365_v1 = vmul.f32 %v2438_v48, %v1345_v56  ;;  %v1139_v57 = vld [vmem:[#allocation2 + $0x59] sm:$0xff] }
 0x1f0   : > { %v1445_v60 = vadd.f32 %v1444_v63, %v1430_v46  ;;  %v1468_v47 = vmul.f32 %v1430_v46, %v1430_v46  ;;  %v1226_v44 = vadd.f32 %v1210_v31, %v1174_v22  ;;  %v1417_v27 = vmul.f32 %v2453_v51, %v1397_v28  ;;  %v1191_v54 = vld [vmem:[#allocation2 + $0x5a] sm:$0xff] }
 0x1f1   : > { %v1431_v20 = vadd.f32 %v1415_v62, %v1379_v52  ;;  %v1432_v50 = vadd.f32 %v2584_v39, %v1380_v38  ;;  %v1381_v53 = vadd.f32 %v1365_v1, %v1329_v9  ;;  %2039 = vrcp.f32 %v1023_v3  ;;  %v1294_v55 = vld [vmem:[#allocation2 + $0x54] sm:$0xff] }
 0x1f2   : > { %v1483_v16 = vadd.f32 %v1482_v17, %v1468_v47  ;;  %v1278_v36 = vadd.f32 %v1262_v23, %v1226_v44  ;;  %v1123_v0 = vmul.f32 %v2419_v41, %v1103_v14  ;;  %v1159_v11 = vmul.f32 %v2423_v42, %v1139_v57  ;;  %v1346_v62 = vld [vmem:[#allocation2 + $0x55] sm:$0xff]  ;;  %v1104_v40 = vld [vmem:[#allocation2 + $0x60] sm:$0xff] }
 0x1f3   : > { %v1446_v32 = vadd.f32 %v1445_v60, %v1431_v20  ;;  %v1469_v10 = vmul.f32 %v1431_v20, %v1431_v20  ;;  %v1854_v58 = vpack.c.bf16 %v1431_v20, %v1430_v46  ;;  %v1433_v59 = vadd.f32 %v1417_v27, %v1381_v53  ;;  %v1398_v30 = vld [vmem:[#allocation2 + $0x56] sm:$0xff]  ;;  %v1140_v4 = vld [vmem:[#allocation2 + $0x61] sm:$0xff] }
 0x1f4   : > { %v1470_v7 = vmul.f32 %v1432_v50, %v1432_v50  ;;  %v1211_v8 = vmul.f32 %v2433_v6, %v1191_v54  ;;  %v1314_v63 = vmul.f32 %v2435_v19, %v1294_v55  ;;  %v1295_v12 = vld [vmem:[#allocation2 + $0x5c] sm:$0xff]  ;;  %v1024_v45 = vadd.f32 1.0, %v2036_v2 }
 0x1f5   : > { %v1484_v5 = vadd.f32 %v1483_v16, %v1469_v10  ;;  %1878 = vst [vmem:[%s2512_s10 + $0x18] sm:$0xff] %v1854_v58   ;;  %v1447_v39 = vadd.f32 %v1446_v32, %v1432_v50  ;;  %v1859_v34 = vpack.c.bf16 %v1433_v59, %v1432_v50  ;;  %v1471_v61 = vmul.f32 %v1433_v59, %v1433_v59  ;;  %v1347_v28 = vld [vmem:[#allocation2 + $0x5d] sm:$0xff] }
 0x1f6   : > { %v1175_v35 = vadd.f32 %v1159_v11, %v1123_v0  ;;  %v1263_v56 = vmul.f32 %v2428_v21, %v2608_v26  ;;  %v1330_v17 = vadd.f32 %v1314_v63, %v1278_v36  ;;  %v1366_v24 = vmul.f32 %v2438_v48, %v1346_v62  ;;  %v1399_v20 = vld [vmem:[#allocation2 + $0x5e] sm:$0xff] }
 0x1f7   : > { %v1448_v13 = vadd.f32 %v1447_v39, %v1433_v59  ;;  %v1485_v29 = vadd.f32 %v1484_v5, %v1470_v7  ;;  %1879 = vst [vmem:[%s2512_s10 + $0x20] sm:$0xff] %v1859_v34   ;;  %v1418_v52 = vmul.f32 %v2453_v51, %v1398_v30  ;;  %v1315_v46 = vmul.f32 %v2435_v19, %v1295_v12  ;;  %v1192_v60 = vld [vmem:[#allocation2 + $0x62] sm:$0xff] }
 0x1f8   : > { %v1227_v3 = vadd.f32 %v1211_v8, %v1175_v35  ;;  %v1382_v2 = vadd.f32 %v1366_v24, %v1330_v17  ;;  %v1124_v22 = vmul.f32 %v2419_v41, %v1104_v40  ;;  %v1160_v31 = vmul.f32 %v2423_v42, %v1140_v4 }
 0x1f9   : > { %v1486_v15 = vadd.f32 %v1485_v29, %v1471_v61  ;;  %2041 = vrcp.f32 %v1024_v45  ;;  %v948_v26 = vadd.f32 %v2473_v37, %v2397_v25  ;;  %v1025_v23 = vadd.f32 1.0, %v2622_v18 }
 0x1fa   : > { %v1279_v38 = vadd.f32 %v1263_v56, %v1227_v3  ;;  %v1434_v1 = vadd.f32 %v1418_v52, %v1382_v2  ;;  %v1367_v44 = vmul.f32 %v2438_v48, %v1347_v28  ;;  %v1176_v32 = vadd.f32 %v1160_v31, %v1124_v22 }
 0x1fb   : > { %v2040_v9 = vpop.eup %2039  ;;  %2043 = vrcp.f32 %v1025_v23  ;;  %v1419_v16 = vmul.f32 %v2453_v51, %v1399_v20  ;;  %v1212_v18 = vmul.f32 %v2433_v6, %v1192_v60  ;;  %v954_v59 = vadd.f32 %v2495_v49, %v2397_v25 }
 0x1fc   : > { %v1331_v47 = vadd.f32 %v1315_v46, %v1279_v38  ;;  %v1071_v50 = vmul.f32 %v2040_v9, %v948_v26  ;;  %v1449_v53 = vadd.f32 %v1448_v13, %v1434_v1  ;;  %v1472_v27 = vmul.f32 %v1434_v1, %v1434_v1 }
 0x1fd   : > { %v1228_v14 = vadd.f32 %v1212_v18, %v1176_v32  ;;  %v1264_v55 = vmul.f32 %v2428_v21, %v2611_v33  ;;  %v958_v8 = vadd.f32 %v2507_v43, %v2397_v25 }
 0x1fe   : > { %v1383_v10 = vadd.f32 %v1367_v44, %v1331_v47  ;;  %1087 = vst [vmem:[#allocation2 + $0x6b] sm:$0xff] %v1071_v50  ;;  %v1487_v37 = vadd.f32 %v1486_v15, %v1472_v27  ;;  %v1265_v43 = vmul.f32 %v2428_v21, %v1071_v50 }
 0x1ff   : > { %v1280_v7 = vadd.f32 %v1264_v55, %v1228_v14 }
 0x200   : > { %v1435_v58 = vadd.f32 %v1419_v16, %v1383_v10 }
 0x202   : > { %v1450_v57 = vadd.f32 %v1449_v53, %v1435_v58  ;;  %v1473_v54 = vmul.f32 %v1435_v58, %v1435_v58  ;;  %v1864_v36 = vpack.c.bf16 %v1435_v58, %v1434_v1 }
 0x203   : > { %v2042_v0 = vpop.eup %2041 }
 0x204   : > { %v1488_v5 = vadd.f32 %v1487_v37, %v1473_v54  ;;  %1880 = vst [vmem:[%s2512_s10 + $0x28] sm:$0xff] %v1864_v36   ;;  %v1072_v39 = vmul.f32 %v2042_v0, %v954_v59 }
 0x205   : > { %v1105_v11 = vld [vmem:[#allocation2 + $0x68] sm:$0xff]  ;;  %v2044_v63 = vpop.eup %2043 }
 0x206   : > { %v1141_v62 = vld [vmem:[#allocation2 + $0x69] sm:$0xff]  ;;  %v1125_v30 = vmul.f32 %v2419_v41, %v1105_v11  ;;  %1088 = vst [vmem:[#allocation2 + $0x73] sm:$0xff] %v1072_v39  ;;  %v1073_v13 = vmul.f32 %v2044_v63, %v958_v8  ;;  %v1266_v18 = vmul.f32 %v2428_v21, %v1072_v39 }
 0x207   : > { %v1193_v34 = vld [vmem:[#allocation2 + $0x6a] sm:$0xff]  ;;  %v1161_v12 = vmul.f32 %v2423_v42, %v1141_v62 }
 0x208   : > { %v1296_v49 = vld [vmem:[#allocation2 + $0x64] sm:$0xff]  ;;  %v1213_v29 = vmul.f32 %v2433_v6, %v1193_v34  ;;  %1089 = vst [vmem:[#allocation2 + $0x7b] sm:$0xff] %v1073_v13 }
 0x209   : > { %v1348_v45 = vld [vmem:[#allocation2 + $0x65] sm:$0xff]  ;;  %v1316_v33 = vmul.f32 %v2435_v19, %v1296_v49  ;;  %v1177_v61 = vadd.f32 %v1161_v12, %v1125_v30 }
 0x20a   : > { %v1400_v35 = vld [vmem:[#allocation2 + $0x66] sm:$0xff]  ;;  %v1368_v4 = vmul.f32 %v2438_v48, %v1348_v45 }
 0x20b   : > { %v1332_v40 = vadd.f32 %v1316_v33, %v1280_v7  ;;  %v1229_v25 = vadd.f32 %v1213_v29, %v1177_v61  ;;  %v1420_v17 = vmul.f32 %v2453_v51, %v1400_v35 }
 0x20d   : > { %v1384_v56 = vadd.f32 %v1368_v4, %v1332_v40  ;;  %v1281_v24 = vadd.f32 %v1265_v43, %v1229_v25  ;;  %v1106_v3 = vld [vmem:[#allocation2 + $0x70] sm:$0xff] }
 0x20e   : > { %v1142_v52 = vld [vmem:[#allocation2 + $0x71] sm:$0xff]  ;;  %v1126_v2 = vmul.f32 %v2419_v41, %v1106_v3 }
 0x20f   : > { %v1436_v15 = vadd.f32 %v1420_v17, %v1384_v56  ;;  %v1194_v46 = vld [vmem:[#allocation2 + $0x72] sm:$0xff]  ;;  %v1162_v22 = vmul.f32 %v2423_v42, %v1142_v52  ;;  %v1195_v50 = vld [vmem:[#allocation2 + $0x7a] sm:$0xff] }
 0x210   : > { %v1297_v31 = vld [vmem:[#allocation2 + $0x6c] sm:$0xff]  ;;  %v1214_v20 = vmul.f32 %v2433_v6, %v1194_v46  ;;  %v1107_v47 = vld [vmem:[#allocation2 + $0x78] sm:$0xff]  ;;  %v1215_v54 = vmul.f32 %v2433_v6, %v1195_v50 }
 0x211   : > { %v1349_v28 = vld [vmem:[#allocation2 + $0x6d] sm:$0xff]  ;;  %v1451_v38 = vadd.f32 %v1450_v57, %v1436_v15  ;;  %v1474_v26 = vmul.f32 %v1436_v15, %v1436_v15  ;;  %v1317_v23 = vmul.f32 %v2435_v19, %v1297_v31  ;;  %v1178_v1 = vadd.f32 %v1162_v22, %v1126_v2  ;;  %v1143_v44 = vld [vmem:[#allocation2 + $0x79] sm:$0xff] }
 0x212   : > { %v1401_v9 = vld [vmem:[#allocation2 + $0x6e] sm:$0xff]  ;;  %v1369_v60 = vmul.f32 %v2438_v48, %v1349_v28  ;;  %v1127_v32 = vmul.f32 %v2419_v41, %v1107_v47  ;;  %v1163_v10 = vmul.f32 %v2423_v42, %v1143_v44  ;;  %v1299_v36 = vld [vmem:[#allocation2 + $0x7c] sm:$0xff]  ;;  %v1267_v42 = vmul.f32 %v2428_v21, %v1073_v13 }
 0x213   : > { %v1489_v53 = vadd.f32 %v1488_v5, %v1474_v26  ;;  %v1333_v27 = vadd.f32 %v1317_v23, %v1281_v24  ;;  %v1298_v16 = vld [vmem:[#allocation2 + $0x74] sm:$0xff]  ;;  %v1230_v37 = vadd.f32 %v1214_v20, %v1178_v1  ;;  %v1421_v14 = vmul.f32 %v2453_v51, %v1401_v9  ;;  %v1351_v62 = vld [vmem:[#allocation2 + $0x7d] sm:$0xff] }
 0x214   : > { %v1179_v57 = vadd.f32 %v1163_v10, %v1127_v32  ;;  %v1350_v59 = vld [vmem:[#allocation2 + $0x75] sm:$0xff]  ;;  %v1318_v55 = vmul.f32 %v2435_v19, %v1298_v16  ;;  %v1319_v11 = vmul.f32 %v2435_v19, %v1299_v36  ;;  %v1403_v49 = vld [vmem:[#allocation2 + $0x7e] sm:$0xff]  ;;  %v1371_v21 = vmul.f32 %v2438_v48, %v1351_v62 }
 0x215   : > { %v1385_v58 = vadd.f32 %v1369_v60, %v1333_v27  ;;  %v1282_v0 = vadd.f32 %v1266_v18, %v1230_v37  ;;  %v1402_v7 = vld [vmem:[#allocation2 + $0x76] sm:$0xff]  ;;  %v1370_v34 = vmul.f32 %v2438_v48, %v1350_v59  ;;  %v1423_v29 = vmul.f32 %v2453_v51, %v1403_v49 }
 0x216   : > { %v1231_v41 = vadd.f32 %v1215_v54, %v1179_v57  ;;  %v1422_v45 = vmul.f32 %v2453_v51, %v1402_v7 }
 0x217   : > { %v1437_v5 = vadd.f32 %v1421_v14, %v1385_v58  ;;  %v1334_v39 = vadd.f32 %v1318_v55, %v1282_v0 }
 0x218   : > { %v1283_v30 = vadd.f32 %v1267_v42, %v1231_v41 }
 0x219   : > { %v1452_v8 = vadd.f32 %v1451_v38, %v1437_v5  ;;  %v1475_v63 = vmul.f32 %v1437_v5, %v1437_v5  ;;  %v1869_v6 = vpack.c.bf16 %v1437_v5, %v1436_v15  ;;  %v1386_v12 = vadd.f32 %v1370_v34, %v1334_v39 }
 0x21a   : > { %v1335_v61 = vadd.f32 %v1319_v11, %v1283_v30 }
 0x21b   : > { %v1490_v33 = vadd.f32 %v1489_v53, %v1475_v63  ;;  %1881 = vst [vmem:[%s2512_s10 + $0x30] sm:$0xff] %v1869_v6   ;;  %v1438_v13 = vadd.f32 %v1422_v45, %v1386_v12 }
 0x21c   : > { %v1387_v19 = vadd.f32 %v1371_v21, %v1335_v61 }
 0x21d   : > { %v1453_v35 = vadd.f32 %v1452_v8, %v1438_v13  ;;  %v1476_v40 = vmul.f32 %v1438_v13, %v1438_v13 }
 0x21e   : > { %v1439_v4 = vadd.f32 %v1423_v29, %v1387_v19 }
 0x21f   : > { %v1491_v25 = vadd.f32 %v1490_v33, %v1476_v40 }
 0x220   : > { %v1454_v43 = vadd.f32 %v1453_v35, %v1439_v4  ;;  %v1477_v56 = vmul.f32 %v1439_v4, %v1439_v4  ;;  %v1874_v17 = vpack.c.bf16 %v1439_v4, %v1438_v13 }
 0x222   : > { %v1455_v24 = vrot.slane %v1454_v43, 4  ;;  %v1492_v15 = vadd.f32 %v1491_v25, %v1477_v56  ;;  %1882 = vst [vmem:[%s2512_s10 + $0x38] sm:$0xff] %v1874_v17  }
 0x224   : > { %v1456_v3 = vadd.f32 %v1455_v24, %v1454_v43  ;;  %v1493_v52 = vrot.slane %v1492_v15, 4 }
 0x226   : > { %v1457_v46 = vrot.slane %v1456_v3, 2  ;;  %v1494_v48 = vadd.f32 %v1493_v52, %v1492_v15 }
 0x228   : > { %v1458_v2 = vadd.f32 %v1457_v46, %v1456_v3  ;;  %v1495_v22 = vrot.slane %v1494_v48, 2 }
 0x22a   : > { %v1459_v31 = vrot.slane %v1458_v2, 1  ;;  %v1496_v51 = vadd.f32 %v1495_v22, %v1494_v48 }
 0x22c   : > { %v1460_v28 = vadd.f32 %v1459_v31, %v1458_v2  ;;  %v1497_v38 = vrot.slane %v1496_v51, 1 }
 0x22e   : > { %1461 = vst [vmem:[%s483_s14] sm:$0x1] %v1460_v28  ;;  %v1498_v26 = vadd.f32 %v1497_v38, %v1496_v51 }
 0x230   : > { %1499 = vst [vmem:[%s488_s17] sm:$0x1] %v1498_v26 }
 0x231 PF: > { %s19_s27 = sadd.s32 1, %s2067_s27   ;;  %s2714_s26 = smov %s2063_s2 }
 0x232   : > { %p16_p5 = scmp.ge.s32.totalorder %s19_s27, 4   ;;  %s2715_s2 = smov %s2717_s28 }
 0x234   :  { %18 = sbr.rel (!%p16_p5) target bundleno = 2 (0x2), region = 104 }

</bundles_post_ra>
